<compile_context>
chip_gen: v7x
topology: tpu7x:2x2x1
jax: 0.10.0
libtpu: 0.0.40
codegen_flags: <defaults>
</compile_context>

<pallas_src>
import functools

import jax
import jax.numpy as jnp
from jax.experimental import pallas as pl
from jax.experimental.pallas import tpu as pltpu

IN_FEAT = 784
IN_PAD = 896          # 7 * 128
HID = 400
LATENT = 20
LATENT_PAD = 128      # lane-dense latent


def vae_kernel(x_ref, eps_ref,
               w1_ref, b1_ref, wh_ref, bh_ref, w3_ref, b3_ref, w4_ref, b4_ref,
               recon_ref, mu_ref, logvar_ref):
    # x: (TB, 896) bf16, eps: (TB, 128) f32, weights bf16, biases f32.
    x = x_ref[...]

    # encode: fc1 + relu
    h1 = jnp.dot(x, w1_ref[...], preferred_element_type=jnp.float32) + b1_ref[...]
    h1 = jnp.maximum(h1, 0.0)

    # fused encoder head: [mu | logvar] in one MXU pass (lanes 0:128 / 128:256)
    head = jnp.dot(h1.astype(jnp.bfloat16), wh_ref[...],
                   preferred_element_type=jnp.float32) + bh_ref[...]
    mu = head[:, :LATENT_PAD]
    logvar = head[:, LATENT_PAD:]

    # reparametrize: std = exp(0.5*logvar); z = eps*std + mu
    # (padded latent lanes: weights/bias/eps are zero => mu=0, logvar=0, eps=0 => z=0)
    std = jnp.exp(logvar * 0.5)
    z = eps_ref[...] * std + mu

    # decode: fc3 + relu, fc4 + tanh
    h3 = jnp.dot(z.astype(jnp.bfloat16), w3_ref[...],
                 preferred_element_type=jnp.float32) + b3_ref[...]
    h3 = jnp.maximum(h3, 0.0)
    recon = jnp.tanh(jnp.dot(h3.astype(jnp.bfloat16), w4_ref[...],
                             preferred_element_type=jnp.float32) + b4_ref[...])

    recon_ref[...] = recon
    mu_ref[...] = mu
    logvar_ref[...] = logvar


def pack_params(params):
    """Pad/fuse/cast the f32 (in,out)-layout params into kernel layout (bf16 weights)."""
    w1, b1 = params["fc1"]
    w21, b21 = params["fc21"]
    w22, b22 = params["fc22"]
    w3, b3 = params["fc3"]
    w4, b4 = params["fc4"]

    bf = jnp.bfloat16
    w1p = jnp.zeros((IN_PAD, HID), bf).at[:IN_FEAT, :].set(w1.astype(bf))

    wh = jnp.zeros((HID, 2 * LATENT_PAD), bf)
    wh = wh.at[:, :LATENT].set(w21.astype(bf))
    wh = wh.at[:, LATENT_PAD:LATENT_PAD + LATENT].set(w22.astype(bf))
    bh = jnp.zeros((1, 2 * LATENT_PAD), jnp.float32)
    bh = bh.at[:, :LATENT].set(b21)
    bh = bh.at[:, LATENT_PAD:LATENT_PAD + LATENT].set(b22)

    w3p = jnp.zeros((LATENT_PAD, HID), bf).at[:LATENT, :].set(w3.astype(bf))
    w4p = jnp.zeros((HID, IN_PAD), bf).at[:, :IN_FEAT].set(w4.astype(bf))
    b4p = jnp.zeros((1, IN_PAD), jnp.float32).at[:, :IN_FEAT].set(b4)

    return dict(w1=w1p, b1=b1, wh=wh, bh=bh, w3=w3p, b3=b3, w4=w4p, b4=b4p)


@functools.partial(jax.jit, static_argnames=())
def vae_forward(x, eps, packed):
    """x: (B, 784) f32, eps: (B, 20) f32, packed: output of pack_params."""
    B = x.shape[0]
    # Batch tile: 256 rows at scale (good MXU M on v6e/v7x), >=16 for bf16 sublane packing.
    TB = 256 if B >= 256 else max(16, ((B + 15) // 16) * 16)
    B_pad = pl.cdiv(B, TB) * TB
    grid = (B_pad // TB,)

    xp = jnp.zeros((B_pad, IN_PAD), jnp.bfloat16).at[:B, :IN_FEAT].set(
        x.astype(jnp.bfloat16))
    epsp = jnp.zeros((B_pad, LATENT_PAD), jnp.float32).at[:B, :LATENT].set(eps)

    def resident(shape):
        # Weights/biases: full-array block, same block every grid step -> stays in VMEM.
        return pl.BlockSpec(shape, lambda i: (0, 0))

    in_specs = [
        pl.BlockSpec((TB, IN_PAD), lambda i: (i, 0)),        # x tile
        pl.BlockSpec((TB, LATENT_PAD), lambda i: (i, 0)),    # eps tile
        resident((IN_PAD, HID)), resident((1, HID)),         # fc1
        resident((HID, 2 * LATENT_PAD)), resident((1, 2 * LATENT_PAD)),  # fused head
        resident((LATENT_PAD, HID)), resident((1, HID)),     # fc3
        resident((HID, IN_PAD)), resident((1, IN_PAD)),      # fc4
    ]
    out_specs = (
        pl.BlockSpec((TB, IN_PAD), lambda i: (i, 0)),
        pl.BlockSpec((TB, LATENT_PAD), lambda i: (i, 0)),
        pl.BlockSpec((TB, LATENT_PAD), lambda i: (i, 0)),
    )
    out_shape = (
        jax.ShapeDtypeStruct((B_pad, IN_PAD), jnp.float32),      # recon (padded)
        jax.ShapeDtypeStruct((B_pad, LATENT_PAD), jnp.float32),  # mu (padded)
        jax.ShapeDtypeStruct((B_pad, LATENT_PAD), jnp.float32),  # logvar (padded)
    )

    recon_p, mu_p, lv_p = pl.pallas_call(
        vae_kernel,
        out_shape=out_shape,
        grid=grid,
        in_specs=in_specs,
        out_specs=out_specs,
        compiler_params=pltpu.CompilerParams(
            dimension_semantics=("parallel",)),
    )(xp, epsp,
      packed["w1"], packed["b1"], packed["wh"], packed["bh"],
      packed["w3"], packed["b3"], packed["w4"], packed["b4"])

    return (recon_p[:B, :IN_FEAT], mu_p[:B, :LATENT], lv_p[:B, :LATENT])


def init_params(key):
    """Deterministic init mimicking nn.Linear default (uniform +-1/sqrt(fan_in)).
    Weights stored transposed as (in_features, out_features), biases as (1, out)."""
    dims = {
        "fc1": (IN_FEAT, HID),
        "fc21": (HID, LATENT),
        "fc22": (HID, LATENT),
        "fc3": (LATENT, HID),
        "fc4": (HID, IN_FEAT),
    }
    params = {}
    for name, (fan_in, fan_out) in dims.items():
        key, kw, kb = jax.random.split(key, 3)
        bound = 1.0 / jnp.sqrt(fan_in)
        w = jax.random.uniform(kw, (fan_in, fan_out), jnp.float32, -bound, bound)
        b = jax.random.uniform(kb, (1, fan_out), jnp.float32, -bound, bound)
        params[name] = (w, b)
    return params


def ref_forward(x, eps, params):
    """Pure-JAX reference using the same bf16 weight quantization as the kernel."""
    bf = jnp.bfloat16

    def lin(a, w, b):
        return jnp.dot(a.astype(bf), w.astype(bf),
                       preferred_element_type=jnp.float32) + b

    h1 = jnp.maximum(lin(x, *params["fc1"]), 0.0)
    mu = lin(h1, *params["fc21"])
    lv = lin(h1, *params["fc22"])
    z = eps * jnp.exp(0.5 * lv) + mu
    h3 = jnp.maximum(lin(z, *params["fc3"]), 0.0)
    recon = jnp.tanh(lin(h3, *params["fc4"]))
    return recon, mu, lv


if __name__ == "__main__":
    key = jax.random.PRNGKey(0)
    k_params, k_x, k_eps = jax.random.split(key, 3)

    B = 8
    params = init_params(k_params)
    packed = pack_params(params)

    x = jax.random.uniform(k_x, (B, IN_FEAT), jnp.float32)      # MNIST-like flat input
    eps = jax.random.normal(k_eps, (B, LATENT), jnp.float32)    # reparam noise
    # NOTE: torch draws eps inside forward; here we pass it in explicitly
    # (deterministic PRNGKey) with identical reparametrization math.

    recon, mu, logvar = vae_forward(x, eps, packed)
    jax.block_until_ready((recon, mu, logvar))

    r_ref, mu_r, lv_r = ref_forward(x, eps, params)
    assert recon.shape == (B, IN_FEAT) and mu.shape == (B, LATENT) and logvar.shape == (B, LATENT)
    assert jnp.allclose(mu, mu_r, atol=2e-2, rtol=2e-2)
    assert jnp.allclose(logvar, lv_r, atol=2e-2, rtol=2e-2)
    assert jnp.allclose(recon, r_ref, atol=2e-2, rtol=2e-2)

    print("KERNEL_OK")
</pallas_src>

<mosaic_0001>
module attributes {stable_mosaic.version = 11 : i64} {
  func.func @vae_kernel(%arg0: i32, %arg1: memref<16x896xbf16, #tpu.memory_space<vmem>>, %arg2: memref<16x128xf32, #tpu.memory_space<vmem>>, %arg3: memref<896x400xbf16, #tpu.memory_space<vmem>>, %arg4: memref<1x400xf32, #tpu.memory_space<vmem>>, %arg5: memref<400x256xbf16, #tpu.memory_space<vmem>>, %arg6: memref<1x256xf32, #tpu.memory_space<vmem>>, %arg7: memref<128x400xbf16, #tpu.memory_space<vmem>>, %arg8: memref<1x400xf32, #tpu.memory_space<vmem>>, %arg9: memref<400x896xbf16, #tpu.memory_space<vmem>>, %arg10: memref<1x896xf32, #tpu.memory_space<vmem>>, %arg11: memref<16x896xf32, #tpu.memory_space<vmem>>, %arg12: memref<16x128xf32, #tpu.memory_space<vmem>>, %arg13: memref<16x128xf32, #tpu.memory_space<vmem>>) attributes {dimension_semantics = [#tpu.dimension_semantics<parallel>], iteration_bounds = array<i64: 1>, scalar_prefetch = 0 : i64, scratch_operands = 0 : i64, tpu.core_type = #tpu.core_type<tc>, window_params = [{transform_indices = @transform_0, window_bounds = array<i64: 16, 896>}, {transform_indices = @transform_1, window_bounds = array<i64: 16, 128>}, {pipeline_mode = #tpu.pipeline_mode<synchronous>, transform_indices = @transform_2, window_bounds = array<i64: 896, 400>}, {pipeline_mode = #tpu.pipeline_mode<synchronous>, transform_indices = @transform_3, window_bounds = array<i64: 1, 400>}, {pipeline_mode = #tpu.pipeline_mode<synchronous>, transform_indices = @transform_4, window_bounds = array<i64: 400, 256>}, {pipeline_mode = #tpu.pipeline_mode<synchronous>, transform_indices = @transform_5, window_bounds = array<i64: 1, 256>}, {pipeline_mode = #tpu.pipeline_mode<synchronous>, transform_indices = @transform_6, window_bounds = array<i64: 128, 400>}, {pipeline_mode = #tpu.pipeline_mode<synchronous>, transform_indices = @transform_7, window_bounds = array<i64: 1, 400>}, {pipeline_mode = #tpu.pipeline_mode<synchronous>, transform_indices = @transform_8, window_bounds = array<i64: 400, 896>}, {pipeline_mode = #tpu.pipeline_mode<synchronous>, transform_indices = @transform_9, window_bounds = array<i64: 1, 896>}, {transform_indices = @transform_10, window_bounds = array<i64: 16, 896>}, {transform_indices = @transform_11, window_bounds = array<i64: 16, 128>}, {transform_indices = @transform_12, window_bounds = array<i64: 16, 128>}]} {
    %c0 = arith.constant 0 : index
    %c0_0 = arith.constant 0 : index
    %0 = vector.load %arg1[%c0, %c0_0] : memref<16x896xbf16, #tpu.memory_space<vmem>>, vector<16x896xbf16>
    %c0_1 = arith.constant 0 : index
    %c0_2 = arith.constant 0 : index
    %1 = vector.load %arg3[%c0_1, %c0_2] : memref<896x400xbf16, #tpu.memory_space<vmem>>, vector<896x400xbf16>
    %cst = arith.constant dense<0.000000e+00> : vector<16x400xf32>
    %2 = tpu.matmul %0, %1, %cst {dimension_numbers = #tpu.dot_dimension_numbers<[1], [0], [0], [1], [0, 0, 1, 1], [], []>} : vector<16x896xbf16>, vector<896x400xbf16>, vector<16x400xf32> -> vector<16x400xf32>
    %c0_3 = arith.constant 0 : index
    %c0_4 = arith.constant 0 : index
    %3 = vector.load %arg4[%c0_3, %c0_4] : memref<1x400xf32, #tpu.memory_space<vmem>>, vector<1x400xf32>
    %4 = vector.broadcast %3 : vector<1x400xf32> to vector<16x400xf32>
    %5 = arith.addf %2, %4 : vector<16x400xf32>
    %cst_5 = arith.constant 0.000000e+00 : f32
    %6 = vector.broadcast %cst_5 : f32 to vector<16x400xf32>
    %7 = arith.maximumf %5, %6 : vector<16x400xf32>
    %8 = arith.truncf %7 : vector<16x400xf32> to vector<16x400xbf16>
    %c0_6 = arith.constant 0 : index
    %c0_7 = arith.constant 0 : index
    %9 = vector.load %arg5[%c0_6, %c0_7] : memref<400x256xbf16, #tpu.memory_space<vmem>>, vector<400x256xbf16>
    %cst_8 = arith.constant dense<0.000000e+00> : vector<16x256xf32>
    %10 = tpu.matmul %8, %9, %cst_8 {dimension_numbers = #tpu.dot_dimension_numbers<[1], [0], [0], [1], [0, 0, 1, 1], [], []>} : vector<16x400xbf16>, vector<400x256xbf16>, vector<16x256xf32> -> vector<16x256xf32>
    %c0_9 = arith.constant 0 : index
    %c0_10 = arith.constant 0 : index
    %11 = vector.load %arg6[%c0_9, %c0_10] : memref<1x256xf32, #tpu.memory_space<vmem>>, vector<1x256xf32>
    %12 = vector.broadcast %11 : vector<1x256xf32> to vector<16x256xf32>
    %13 = arith.addf %10, %12 : vector<16x256xf32>
    %14 = vector.extract_strided_slice %13 {offsets = [0, 0], sizes = [16, 128], strides = [1, 1]} : vector<16x256xf32> to vector<16x128xf32>
    %15 = vector.extract_strided_slice %13 {offsets = [0, 128], sizes = [16, 128], strides = [1, 1]} : vector<16x256xf32> to vector<16x128xf32>
    %cst_11 = arith.constant 5.000000e-01 : f32
    %16 = vector.broadcast %cst_11 : f32 to vector<16x128xf32>
    %17 = arith.mulf %15, %16 : vector<16x128xf32>
    %18 = math.exp %17 : vector<16x128xf32>
    %c0_12 = arith.constant 0 : index
    %c0_13 = arith.constant 0 : index
    %19 = vector.load %arg2[%c0_12, %c0_13] : memref<16x128xf32, #tpu.memory_space<vmem>>, vector<16x128xf32>
    %20 = arith.mulf %19, %18 : vector<16x128xf32>
    %21 = arith.addf %20, %14 : vector<16x128xf32>
    %22 = arith.truncf %21 : vector<16x128xf32> to vector<16x128xbf16>
    %c0_14 = arith.constant 0 : index
    %c0_15 = arith.constant 0 : index
    %23 = vector.load %arg7[%c0_14, %c0_15] : memref<128x400xbf16, #tpu.memory_space<vmem>>, vector<128x400xbf16>
    %cst_16 = arith.constant dense<0.000000e+00> : vector<16x400xf32>
    %24 = tpu.matmul %22, %23, %cst_16 {dimension_numbers = #tpu.dot_dimension_numbers<[1], [0], [0], [1], [0, 0, 1, 1], [], []>} : vector<16x128xbf16>, vector<128x400xbf16>, vector<16x400xf32> -> vector<16x400xf32>
    %c0_17 = arith.constant 0 : index
    %c0_18 = arith.constant 0 : index
    %25 = vector.load %arg8[%c0_17, %c0_18] : memref<1x400xf32, #tpu.memory_space<vmem>>, vector<1x400xf32>
    %26 = vector.broadcast %25 : vector<1x400xf32> to vector<16x400xf32>
    %27 = arith.addf %24, %26 : vector<16x400xf32>
    %cst_19 = arith.constant 0.000000e+00 : f32
    %28 = vector.broadcast %cst_19 : f32 to vector<16x400xf32>
    %29 = arith.maximumf %27, %28 : vector<16x400xf32>
    %30 = arith.truncf %29 : vector<16x400xf32> to vector<16x400xbf16>
    %c0_20 = arith.constant 0 : index
    %c0_21 = arith.constant 0 : index
    %31 = vector.load %arg9[%c0_20, %c0_21] : memref<400x896xbf16, #tpu.memory_space<vmem>>, vector<400x896xbf16>
    %cst_22 = arith.constant dense<0.000000e+00> : vector<16x896xf32>
    %32 = tpu.matmul %30, %31, %cst_22 {dimension_numbers = #tpu.dot_dimension_numbers<[1], [0], [0], [1], [0, 0, 1, 1], [], []>} : vector<16x400xbf16>, vector<400x896xbf16>, vector<16x896xf32> -> vector<16x896xf32>
    %c0_23 = arith.constant 0 : index
    %c0_24 = arith.constant 0 : index
    %33 = vector.load %arg10[%c0_23, %c0_24] : memref<1x896xf32, #tpu.memory_space<vmem>>, vector<1x896xf32>
    %34 = vector.broadcast %33 : vector<1x896xf32> to vector<16x896xf32>
    %35 = arith.addf %32, %34 : vector<16x896xf32>
    %36 = math.tanh %35 : vector<16x896xf32>
    %c0_25 = arith.constant 0 : index
    %c0_26 = arith.constant 0 : index
    %37 = vector.load %arg11[%c0_25, %c0_26] : memref<16x896xf32, #tpu.memory_space<vmem>>, vector<16x896xf32>
    tpu.vector_store %arg11[%c0_25, %c0_26], %36 {strides = array<i32>} : memref<16x896xf32, #tpu.memory_space<vmem>>, vector<16x896xf32>,
    %c0_27 = arith.constant 0 : index
    %c0_28 = arith.constant 0 : index
    %38 = vector.load %arg12[%c0_27, %c0_28] : memref<16x128xf32, #tpu.memory_space<vmem>>, vector<16x128xf32>
    tpu.vector_store %arg12[%c0_27, %c0_28], %14 {strides = array<i32>} : memref<16x128xf32, #tpu.memory_space<vmem>>, vector<16x128xf32>,
    %c0_29 = arith.constant 0 : index
    %c0_30 = arith.constant 0 : index
    %39 = vector.load %arg13[%c0_29, %c0_30] : memref<16x128xf32, #tpu.memory_space<vmem>>, vector<16x128xf32>
    tpu.vector_store %arg13[%c0_29, %c0_30], %15 {strides = array<i32>} : memref<16x128xf32, #tpu.memory_space<vmem>>, vector<16x128xf32>,
    return
  }
  func.func @transform_0(%arg0: i32) -> (i32, i32) {
    %c0_i32 = arith.constant 0 : i32
    %c0_i32_0 = arith.constant 0 : i32
    return %arg0, %c0_i32 : i32, i32
  }
  func.func @transform_1(%arg0: i32) -> (i32, i32) {
    %c0_i32 = arith.constant 0 : i32
    %c0_i32_0 = arith.constant 0 : i32
    return %arg0, %c0_i32 : i32, i32
  }
  func.func @transform_2(%arg0: i32) -> (i32, i32) {
    %c0_i32 = arith.constant 0 : i32
    %c0_i32_0 = arith.constant 0 : i32
    %c0_i32_1 = arith.constant 0 : i32
    return %c0_i32, %c0_i32_0 : i32, i32
  }
  func.func @transform_3(%arg0: i32) -> (i32, i32) {
    %c0_i32 = arith.constant 0 : i32
    %c0_i32_0 = arith.constant 0 : i32
    %c0_i32_1 = arith.constant 0 : i32
    return %c0_i32, %c0_i32_0 : i32, i32
  }
  func.func @transform_4(%arg0: i32) -> (i32, i32) {
    %c0_i32 = arith.constant 0 : i32
    %c0_i32_0 = arith.constant 0 : i32
    %c0_i32_1 = arith.constant 0 : i32
    return %c0_i32, %c0_i32_0 : i32, i32
  }
  func.func @transform_5(%arg0: i32) -> (i32, i32) {
    %c0_i32 = arith.constant 0 : i32
    %c0_i32_0 = arith.constant 0 : i32
    %c0_i32_1 = arith.constant 0 : i32
    return %c0_i32, %c0_i32_0 : i32, i32
  }
  func.func @transform_6(%arg0: i32) -> (i32, i32) {
    %c0_i32 = arith.constant 0 : i32
    %c0_i32_0 = arith.constant 0 : i32
    %c0_i32_1 = arith.constant 0 : i32
    return %c0_i32, %c0_i32_0 : i32, i32
  }
  func.func @transform_7(%arg0: i32) -> (i32, i32) {
    %c0_i32 = arith.constant 0 : i32
    %c0_i32_0 = arith.constant 0 : i32
    %c0_i32_1 = arith.constant 0 : i32
    return %c0_i32, %c0_i32_0 : i32, i32
  }
  func.func @transform_8(%arg0: i32) -> (i32, i32) {
    %c0_i32 = arith.constant 0 : i32
    %c0_i32_0 = arith.constant 0 : i32
    %c0_i32_1 = arith.constant 0 : i32
    return %c0_i32, %c0_i32_0 : i32, i32
  }
  func.func @transform_9(%arg0: i32) -> (i32, i32) {
    %c0_i32 = arith.constant 0 : i32
    %c0_i32_0 = arith.constant 0 : i32
    %c0_i32_1 = arith.constant 0 : i32
    return %c0_i32, %c0_i32_0 : i32, i32
  }
  func.func @transform_10(%arg0: i32) -> (i32, i32) {
    %c0_i32 = arith.constant 0 : i32
    %c0_i32_0 = arith.constant 0 : i32
    return %arg0, %c0_i32 : i32, i32
  }
  func.func @transform_11(%arg0: i32) -> (i32, i32) {
    %c0_i32 = arith.constant 0 : i32
    %c0_i32_0 = arith.constant 0 : i32
    return %arg0, %c0_i32 : i32, i32
  }
  func.func @transform_12(%arg0: i32) -> (i32, i32) {
    %c0_i32 = arith.constant 0 : i32
    %c0_i32_0 = arith.constant 0 : i32
    return %arg0, %c0_i32 : i32, i32
  }
}

</mosaic_0001>

<bundles_post_ra>
// kernel: vae_forward.1
= control target key start
LH: loop header
LB: loop body
LE: loop exit
PB: predicated region body
PF: predicated region fallthrough
CT: control target
= control target key end

     0   :  { %vm2117_vm0 = vcmask 130048   ;;  %s7077_s2 = inlined_call_operand.vmem [shape: bf16[896,400], index: 2, kind: input, shape index: {}]   ;;  %s7078_s0 = inlined_call_operand.vmem [shape: bf16[16,896], index: 0, kind: input, shape index: {}]   ;;  %s7079_s4 = inlined_call_operand.vmem [shape: bf16[400,256], index: 4, kind: input, shape index: {}]   ;;  %s7080_s6 = inlined_call_operand.vmem [shape: bf16[128,400], index: 6, kind: input, shape index: {}]   ;;  %s7081_s3 = inlined_call_operand.vmem [shape: f32[1,400], index: 3, kind: input, shape index: {}]   ;;  %s7082_s8 = inlined_call_operand.vmem [shape: bf16[400,896], index: 8, kind: input, shape index: {}]   ;;  %s7083_s5 = inlined_call_operand.vmem [shape: f32[1,256], index: 5, kind: input, shape index: {}]   ;;  %s7084_s11 = inlined_call_operand.vmem [shape: f32[16,128], index: 11, kind: output, shape index: {1}]   ;;  %s7085_s12 = inlined_call_operand.vmem [shape: f32[16,128], index: 12, kind: output, shape index: {2}]   ;;  %s7086_s1 = inlined_call_operand.vmem [shape: f32[16,128], index: 1, kind: input, shape index: {}]   ;;  %s7087_s7 = inlined_call_operand.vmem [shape: f32[1,400], index: 7, kind: input, shape index: {}]   ;;  %s7088_s9 = inlined_call_operand.vmem [shape: f32[1,896], index: 9, kind: input, shape index: {}]   ;;  %s7089_s10 = inlined_call_operand.vmem [shape: f32[16,896], index: 10, kind: output, shape index: {0}]  }
   0x1   :  { %v4636_v0 = vld [vmem:[%s7077_s2 + $0x4] ss:$16 sps:$4 sm:$0xff]   ;;  %v4638_v1 = vld [vmem:[%s7077_s2 + $0xc] ss:$16 sps:$4 sm:$0xff]   ;;  %v4640_v2 = vld [vmem:[%s7077_s2] ss:$16 sps:$4 sm:$0xff]  }
   0x2   :  { %1449 = vmatprep.subr.bf16.mxu0 %v4636_v0  ;;  %v4641_v3 = vld [vmem:[%s7077_s2 + $0x8] ss:$16 sps:$4 sm:$0xff]   ;;  %1621 = vmatprep.subr.bf16.mxu1 %v4638_v1  ;;  %v4642_v4 = vld [vmem:[%s7077_s2 + $0x24] ss:$16 sps:$4 sm:$0xff]   ;;  %v4644_v5 = vld [vmem:[%s7077_s2 + $0x2c] ss:$16 sps:$4 sm:$0xff]  }
   0x3   :  { %1450 = vmatpush1.bf16.msra.mxu0 %v4640_v2  ;;  %1622 = vmatpush1.bf16.msra.mxu1 %v4641_v3  ;;  %v4646_v6 = vld [vmem:[%s7077_s2 + $0x20] ss:$16 sps:$4 sm:$0xff]   ;;  %v4647_v7 = vld [vmem:[%s7077_s2 + $0x28] ss:$16 sps:$4 sm:$0xff]   ;;  %v4648_v8 = vld [vmem:[%s7077_s2 + $0x44] ss:$16 sps:$4 sm:$0xff]  }
   0x4   :  { %1451 = vmatprep.subr.bf16.mxu0 %v4642_v4  ;;  %1623 = vmatprep.subr.bf16.mxu1 %v4644_v5  ;;  %v4650_v9 = vld [vmem:[%s7077_s2 + $0x4c] ss:$16 sps:$4 sm:$0xff]   ;;  %v4652_v10 = vld [vmem:[%s7077_s2 + $0x40] ss:$16 sps:$4 sm:$0xff]   ;;  %v4653_v11 = vld [vmem:[%s7077_s2 + $0x48] ss:$16 sps:$4 sm:$0xff]  }
   0x5   :  { %v4654_v12 = vld [vmem:[%s7077_s2 + $0x64] ss:$16 sps:$4 sm:$0xff]   ;;  %v4656_v13 = vld [vmem:[%s7077_s2 + $0x6c] ss:$16 sps:$4 sm:$0xff]   ;;  %v4658_v14 = vld [vmem:[%s7077_s2 + $0x60] ss:$16 sps:$4 sm:$0xff]  }
   0x6   :  { %v4659_v15 = vld [vmem:[%s7077_s2 + $0x68] ss:$16 sps:$4 sm:$0xff]   ;;  %v4660_v16 = vld [vmem:[%s7077_s2 + $0x84] ss:$16 sps:$4 sm:$0xff]   ;;  %v4662_v17 = vld [vmem:[%s7077_s2 + $0x8c] ss:$16 sps:$4 sm:$0xff]  }
   0x7   :  { %1452 = vmatpush1.bf16.msra.mxu0 %v4646_v6  ;;  %1624 = vmatpush1.bf16.msra.mxu1 %v4647_v7  ;;  %v4664_v18 = vld [vmem:[%s7077_s2 + $0x80] ss:$16 sps:$4 sm:$0xff]   ;;  %v4665_v19 = vld [vmem:[%s7077_s2 + $0x88] ss:$16 sps:$4 sm:$0xff]   ;;  %v4666_v20 = vld [vmem:[%s7077_s2 + $0xa4] ss:$16 sps:$4 sm:$0xff]  }
   0x8   :  { %1453 = vmatprep.subr.bf16.mxu0 %v4648_v8  ;;  %1625 = vmatprep.subr.bf16.mxu1 %v4650_v9  ;;  %v4668_v21 = vld [vmem:[%s7077_s2 + $0xac] ss:$16 sps:$4 sm:$0xff]   ;;  %v4670_v22 = vld [vmem:[%s7077_s2 + $0xa0] ss:$16 sps:$4 sm:$0xff]   ;;  %v4671_v23 = vld [vmem:[%s7077_s2 + $0xa8] ss:$16 sps:$4 sm:$0xff]  }
   0x9   :  { %v4672_v24 = vld [vmem:[%s7077_s2 + $0xc4] ss:$16 sps:$4 sm:$0xff]   ;;  %v4674_v25 = vld [vmem:[%s7077_s2 + $0xcc] ss:$16 sps:$4 sm:$0xff]   ;;  %v4676_v26 = vld [vmem:[%s7077_s2 + $0xc0] ss:$16 sps:$4 sm:$0xff]  }
   0xa   :  { %v4677_v27 = vld [vmem:[%s7077_s2 + $0xc8] ss:$16 sps:$4 sm:$0xff]   ;;  %v4678_v28 = vld [vmem:[%s7077_s2 + $0xe4] ss:$16 sps:$4 sm:$0xff]   ;;  %v4680_v29 = vld [vmem:[%s7077_s2 + $0xec] ss:$16 sps:$4 sm:$0xff]  }
   0xb   :  { %1454 = vmatpush1.bf16.msra.mxu0 %v4652_v10  ;;  %1626 = vmatpush1.bf16.msra.mxu1 %v4653_v11  ;;  %v4682_v30 = vld [vmem:[%s7077_s2 + $0xe0] ss:$16 sps:$4 sm:$0xff]   ;;  %v4683_v31 = vld [vmem:[%s7077_s2 + $0xe8] ss:$16 sps:$4 sm:$0xff]   ;;  %v4684_v32 = vld [vmem:[%s7077_s2 + $0x104] ss:$16 sps:$4 sm:$0xff]  }
   0xc   :  { %1455 = vmatprep.subr.bf16.mxu0 %v4654_v12  ;;  %1627 = vmatprep.subr.bf16.mxu1 %v4656_v13  ;;  %v4686_v33 = vld [vmem:[%s7077_s2 + $0x10c] ss:$16 sps:$4 sm:$0xff]   ;;  %v4688_v34 = vld [vmem:[%s7077_s2 + $0x100] ss:$16 sps:$4 sm:$0xff]   ;;  %v4689_v35 = vld [vmem:[%s7077_s2 + $0x108] ss:$16 sps:$4 sm:$0xff]  }
   0xd   :  { %v4690_v36 = vld [vmem:[%s7077_s2 + $0x124] ss:$16 sps:$4 sm:$0xff]   ;;  %v4692_v37 = vld [vmem:[%s7077_s2 + $0x12c] ss:$16 sps:$4 sm:$0xff]   ;;  %v4694_v38 = vld [vmem:[%s7077_s2 + $0x120] ss:$16 sps:$4 sm:$0xff]  }
   0xe   :  { %v4695_v39 = vld [vmem:[%s7077_s2 + $0x128] ss:$16 sps:$4 sm:$0xff]   ;;  %v4696_v40 = vld [vmem:[%s7077_s2 + $0x144] ss:$16 sps:$4 sm:$0xff]   ;;  %v4698_v41 = vld [vmem:[%s7077_s2 + $0x14c] ss:$16 sps:$4 sm:$0xff]  }
   0xf   :  { %1456 = vmatpush1.bf16.msra.mxu0 %v4658_v14  ;;  %1628 = vmatpush1.bf16.msra.mxu1 %v4659_v15  ;;  %v4700_v42 = vld [vmem:[%s7077_s2 + $0x140] ss:$16 sps:$4 sm:$0xff]   ;;  %v4701_v43 = vld [vmem:[%s7077_s2 + $0x148] ss:$16 sps:$4 sm:$0xff]   ;;  %v4702_v44 = vld [vmem:[%s7077_s2 + $0x164] ss:$16 sps:$4 sm:$0xff]  }
  0x10   :  { %1457 = vmatprep.subr.bf16.mxu0 %v4660_v16  ;;  %1629 = vmatprep.subr.bf16.mxu1 %v4662_v17  ;;  %v4704_v45 = vld [vmem:[%s7077_s2 + $0x16c] ss:$16 sps:$4 sm:$0xff]   ;;  %v4706_v46 = vld [vmem:[%s7077_s2 + $0x160] ss:$16 sps:$4 sm:$0xff]   ;;  %v4707_v47 = vld [vmem:[%s7077_s2 + $0x168] ss:$16 sps:$4 sm:$0xff]  }
  0x11   :  { %v4734_v48 = vld [vmem:[%s7078_s0 + $0x4] ss:$28 sps:$4 sm:$0xff]   ;;  %v4710_v50 = vld [vmem:[%s7077_s2 + $0x18c] ss:$16 sps:$4 sm:$0xff]   ;;  %v4713_v52 = vld [vmem:[%s7077_s2 + $0x188] ss:$16 sps:$4 sm:$0xff]  }
  0x12   :  { %v4708_v49 = vld [vmem:[%s7077_s2 + $0x184] ss:$16 sps:$4 sm:$0xff]   ;;  %1481 = vmatprep.mubr.bf16.mxu0 %v4734_v48  ;;  %1653 = vmatprep.mubr.bf16.mxu1 %v4734_v48  ;;  %v4712_v51 = vld [vmem:[%s7077_s2 + $0x180] ss:$16 sps:$4 sm:$0xff]   ;;  %v4716_v54 = vld [vmem:[%s7077_s2 + $0x1ac] ss:$16 sps:$4 sm:$0xff]  }
  0x13   :  { %1458 = vmatpush1.bf16.msra.mxu0 %v4664_v18  ;;  %1630 = vmatpush1.bf16.msra.mxu1 %v4665_v19  ;;  %v4714_v53 = vld [vmem:[%s7077_s2 + $0x1a4] ss:$16 sps:$4 sm:$0xff]   ;;  %v4718_v55 = vld [vmem:[%s7077_s2 + $0x1a0] ss:$16 sps:$4 sm:$0xff]   ;;  %v4719_v56 = vld [vmem:[%s7077_s2 + $0x1a8] ss:$16 sps:$4 sm:$0xff]  }
  0x14   :  { %1459 = vmatprep.subr.bf16.mxu0 %v4666_v20  ;;  %1631 = vmatprep.subr.bf16.mxu1 %v4668_v21  ;;  %v4720_v57 = vld [vmem:[%s7077_s2 + $0x1c4] ss:$16 sps:$4 sm:$0xff]   ;;  %v4722_v58 = vld [vmem:[%s7077_s2 + $0x1cc] ss:$16 sps:$4 sm:$0xff]   ;;  %v4724_v59 = vld [vmem:[%s7077_s2 + $0x1c0] ss:$16 sps:$4 sm:$0xff]  }
  0x15   :  { %v4725_v60 = vld [vmem:[%s7077_s2 + $0x1c8] ss:$16 sps:$4 sm:$0xff]   ;;  %v4726_v61 = vld [vmem:[%s7077_s2 + $0x1e4] ss:$16 sps:$4 sm:$0xff]   ;;  %v4728_v62 = vld [vmem:[%s7077_s2 + $0x1ec] ss:$16 sps:$4 sm:$0xff]  }
  0x16   :  { %v4730_v63 = vld [vmem:[%s7077_s2 + $0x1e0] ss:$16 sps:$4 sm:$0xff]   ;;  %v4731_v0 = vld [vmem:[%s7077_s2 + $0x1e8] ss:$16 sps:$4 sm:$0xff]   ;;  %v4737_v1 = vld [vmem:[%s7077_s2 + $0x204] ss:$16 sps:$4 sm:$0xff]  }
  0x17   :  { %1460 = vmatpush1.bf16.msra.mxu0 %v4670_v22  ;;  %1632 = vmatpush1.bf16.msra.mxu1 %v4671_v23  ;;  %v4740_v2 = vld [vmem:[%s7077_s2 + $0x20c] ss:$16 sps:$4 sm:$0xff]   ;;  %v4735_v4 = vld [vmem:[%s7077_s2 + $0x200] ss:$16 sps:$4 sm:$0xff]   ;;  %v4738_v5 = vld [vmem:[%s7077_s2 + $0x208] ss:$16 sps:$4 sm:$0xff]  }
  0x18   :  { %1461 = vmatprep.subr.bf16.mxu0 %v4672_v24  ;;  %1633 = vmatprep.subr.bf16.mxu1 %v4674_v25  ;;  %v4732_v3 = vld [vmem:[%s7078_s0] ss:$28 sps:$4 sm:$0xff]   ;;  %v4743_v6 = vld [vmem:[%s7077_s2 + $0x224] ss:$16 sps:$4 sm:$0xff]   ;;  %v4744_v9 = vld [vmem:[%s7077_s2 + $0x228] ss:$16 sps:$4 sm:$0xff]  }
  0x19   :  { %v4746_v7 = vld [vmem:[%s7077_s2 + $0x22c] ss:$16 sps:$4 sm:$0xff]   ;;  %v4741_v8 = vld [vmem:[%s7077_s2 + $0x220] ss:$16 sps:$4 sm:$0xff]   ;;  %v4749_v10 = vld [vmem:[%s7077_s2 + $0x244] ss:$16 sps:$4 sm:$0xff]  }
  0x1a   :  { %v4752_v11 = vld [vmem:[%s7077_s2 + $0x24c] ss:$16 sps:$4 sm:$0xff]   ;;  %v4747_v12 = vld [vmem:[%s7077_s2 + $0x240] ss:$16 sps:$4 sm:$0xff]   ;;  %v4750_v13 = vld [vmem:[%s7077_s2 + $0x248] ss:$16 sps:$4 sm:$0xff]  }
  0x1b   :  { %1462 = vmatpush1.bf16.msra.mxu0 %v4676_v26  ;;  %1634 = vmatpush1.bf16.msra.mxu1 %v4677_v27  ;;  %v4755_v14 = vld [vmem:[%s7077_s2 + $0x264] ss:$16 sps:$4 sm:$0xff]   ;;  %v4758_v15 = vld [vmem:[%s7077_s2 + $0x26c] ss:$16 sps:$4 sm:$0xff]   ;;  %v4753_v16 = vld [vmem:[%s7077_s2 + $0x260] ss:$16 sps:$4 sm:$0xff]  }
  0x1c   :  { %1463 = vmatprep.subr.bf16.mxu0 %v4678_v28  ;;  %1635 = vmatprep.subr.bf16.mxu1 %v4680_v29  ;;  %v4756_v17 = vld [vmem:[%s7077_s2 + $0x268] ss:$16 sps:$4 sm:$0xff]   ;;  %v4761_v18 = vld [vmem:[%s7077_s2 + $0x284] ss:$16 sps:$4 sm:$0xff]   ;;  %v4764_v19 = vld [vmem:[%s7077_s2 + $0x28c] ss:$16 sps:$4 sm:$0xff]  }
  0x1d   :  { %v4759_v20 = vld [vmem:[%s7077_s2 + $0x280] ss:$16 sps:$4 sm:$0xff]   ;;  %v4762_v21 = vld [vmem:[%s7077_s2 + $0x288] ss:$16 sps:$4 sm:$0xff]   ;;  %v4767_v22 = vld [vmem:[%s7077_s2 + $0x2a4] ss:$16 sps:$4 sm:$0xff]  }
  0x1e   :  { %v4770_v23 = vld [vmem:[%s7077_s2 + $0x2ac] ss:$16 sps:$4 sm:$0xff]   ;;  %v4765_v24 = vld [vmem:[%s7077_s2 + $0x2a0] ss:$16 sps:$4 sm:$0xff]   ;;  %v4768_v25 = vld [vmem:[%s7077_s2 + $0x2a8] ss:$16 sps:$4 sm:$0xff]  }
  0x1f   :  { %1464 = vmatpush1.bf16.msra.mxu0 %v4682_v30  ;;  %1636 = vmatpush1.bf16.msra.mxu1 %v4683_v31  ;;  %v4773_v26 = vld [vmem:[%s7077_s2 + $0x2c4] ss:$16 sps:$4 sm:$0xff]   ;;  %v4776_v27 = vld [vmem:[%s7077_s2 + $0x2cc] ss:$16 sps:$4 sm:$0xff]   ;;  %v4771_v28 = vld [vmem:[%s7077_s2 + $0x2c0] ss:$16 sps:$4 sm:$0xff]  }
  0x20   :  { %1465 = vmatprep.subr.bf16.mxu0 %v4684_v32  ;;  %1637 = vmatprep.subr.bf16.mxu1 %v4686_v33  ;;  %v4774_v29 = vld [vmem:[%s7077_s2 + $0x2c8] ss:$16 sps:$4 sm:$0xff]   ;;  %v4779_v31 = vld [vmem:[%s7077_s2 + $0x2e4] ss:$16 sps:$4 sm:$0xff]   ;;  %v4782_v32 = vld [vmem:[%s7077_s2 + $0x2ec] ss:$16 sps:$4 sm:$0xff]  }
  0x21   :  { %v4833_v30 = vld [vmem:[%s7078_s0 + $0xc] ss:$28 sps:$4 sm:$0xff]   ;;  %v4777_v33 = vld [vmem:[%s7077_s2 + $0x2e0] ss:$16 sps:$4 sm:$0xff]  }
  0x22   :  { %v4806_v48 = vld [vmem:[%s7077_s2 + $0x36c] ss:$16 sps:$4 sm:$0xff]  }
  0x23   :  { %1466 = vmatpush1.bf16.msra.mxu0 %v4688_v34  ;;  %1638 = vmatpush1.bf16.msra.mxu1 %v4689_v35  ;;  %v4780_v34 = vld [vmem:[%s7077_s2 + $0x2e8] ss:$16 sps:$4 sm:$0xff]   ;;  %v4785_v35 = vld [vmem:[%s7077_s2 + $0x304] ss:$16 sps:$4 sm:$0xff]  }
  0x24   :  { %1467 = vmatprep.subr.bf16.mxu0 %v4690_v36  ;;  %1639 = vmatprep.subr.bf16.mxu1 %v4692_v37  ;;  %v4788_v36 = vld [vmem:[%s7077_s2 + $0x30c] ss:$16 sps:$4 sm:$0xff]   ;;  %v4783_v37 = vld [vmem:[%s7077_s2 + $0x300] ss:$16 sps:$4 sm:$0xff]  }
  0x27   :  { %1468 = vmatpush1.bf16.msra.mxu0 %v4694_v38  ;;  %1640 = vmatpush1.bf16.msra.mxu1 %v4695_v39  ;;  %v4786_v38 = vld [vmem:[%s7077_s2 + $0x308] ss:$16 sps:$4 sm:$0xff]   ;;  %v4791_v39 = vld [vmem:[%s7077_s2 + $0x324] ss:$16 sps:$4 sm:$0xff]  }
  0x28   :  { %1469 = vmatprep.subr.bf16.mxu0 %v4696_v40  ;;  %1641 = vmatprep.subr.bf16.mxu1 %v4698_v41  ;;  %v4794_v40 = vld [vmem:[%s7077_s2 + $0x32c] ss:$16 sps:$4 sm:$0xff]   ;;  %v4789_v41 = vld [vmem:[%s7077_s2 + $0x320] ss:$16 sps:$4 sm:$0xff]  }
  0x2b   :  { %1470 = vmatpush1.bf16.msra.mxu0 %v4700_v42  ;;  %1642 = vmatpush1.bf16.msra.mxu1 %v4701_v43  ;;  %v4792_v42 = vld [vmem:[%s7077_s2 + $0x328] ss:$16 sps:$4 sm:$0xff]   ;;  %v4797_v43 = vld [vmem:[%s7077_s2 + $0x344] ss:$16 sps:$4 sm:$0xff]  }
  0x2c   :  { %1471 = vmatprep.subr.bf16.mxu0 %v4702_v44  ;;  %1643 = vmatprep.subr.bf16.mxu1 %v4704_v45  ;;  %v4800_v44 = vld [vmem:[%s7077_s2 + $0x34c] ss:$16 sps:$4 sm:$0xff]   ;;  %v4795_v45 = vld [vmem:[%s7077_s2 + $0x340] ss:$16 sps:$4 sm:$0xff]  }
  0x2f   :  { %1472 = vmatpush1.bf16.msra.mxu0 %v4706_v46  ;;  %1644 = vmatpush1.bf16.msra.mxu1 %v4707_v47  ;;  %v4798_v46 = vld [vmem:[%s7077_s2 + $0x348] ss:$16 sps:$4 sm:$0xff]   ;;  %v4803_v47 = vld [vmem:[%s7077_s2 + $0x364] ss:$16 sps:$4 sm:$0xff]  }
  0x30   :  { %1473 = vmatprep.subr.bf16.mxu0 %v4708_v49  ;;  %1645 = vmatprep.subr.bf16.mxu1 %v4710_v50  ;;  %v4801_v49 = vld [vmem:[%s7077_s2 + $0x360] ss:$16 sps:$4 sm:$0xff]   ;;  %v4804_v50 = vld [vmem:[%s7077_s2 + $0x368] ss:$16 sps:$4 sm:$0xff]  }
  0x33   :  { %1474 = vmatpush1.bf16.msra.mxu0 %v4712_v51  ;;  %1646 = vmatpush1.bf16.msra.mxu1 %v4713_v52  ;;  %v4809_v51 = vld [vmem:[%s7077_s2 + $0x384] ss:$16 sps:$4 sm:$0xff]   ;;  %v4812_v52 = vld [vmem:[%s7077_s2 + $0x38c] ss:$16 sps:$4 sm:$0xff]  }
  0x34   :  { %1475 = vmatprep.subr.bf16.mxu0 %v4714_v53  ;;  %1647 = vmatprep.subr.bf16.mxu1 %v4716_v54  ;;  %v4807_v53 = vld [vmem:[%s7077_s2 + $0x380] ss:$16 sps:$4 sm:$0xff]   ;;  %v4810_v54 = vld [vmem:[%s7077_s2 + $0x388] ss:$16 sps:$4 sm:$0xff]  }
  0x37   :  { %1476 = vmatpush1.bf16.msra.mxu0 %v4718_v55  ;;  %1648 = vmatpush1.bf16.msra.mxu1 %v4719_v56  ;;  %v4815_v55 = vld [vmem:[%s7077_s2 + $0x3a4] ss:$16 sps:$4 sm:$0xff]   ;;  %v4818_v56 = vld [vmem:[%s7077_s2 + $0x3ac] ss:$16 sps:$4 sm:$0xff]  }
  0x38   :  { %1477 = vmatprep.subr.bf16.mxu0 %v4720_v57  ;;  %1649 = vmatprep.subr.bf16.mxu1 %v4722_v58  ;;  %v4813_v57 = vld [vmem:[%s7077_s2 + $0x3a0] ss:$16 sps:$4 sm:$0xff]   ;;  %v4816_v58 = vld [vmem:[%s7077_s2 + $0x3a8] ss:$16 sps:$4 sm:$0xff]  }
  0x3b   :  { %1478 = vmatpush1.bf16.msra.mxu0 %v4724_v59  ;;  %1650 = vmatpush1.bf16.msra.mxu1 %v4725_v60  ;;  %v4821_v59 = vld [vmem:[%s7077_s2 + $0x3c4] ss:$16 sps:$4 sm:$0xff]   ;;  %v4824_v60 = vld [vmem:[%s7077_s2 + $0x3cc] ss:$16 sps:$4 sm:$0xff]  }
  0x3c   :  { %1479 = vmatprep.subr.bf16.mxu0 %v4726_v61  ;;  %1651 = vmatprep.subr.bf16.mxu1 %v4728_v62  ;;  %v4819_v61 = vld [vmem:[%s7077_s2 + $0x3c0] ss:$16 sps:$4 sm:$0xff]   ;;  %v4822_v62 = vld [vmem:[%s7077_s2 + $0x3c8] ss:$16 sps:$4 sm:$0xff]  }
  0x3f   :  { %1480 = vmatpush1.bf16.msra.mxu0 %v4730_v63  ;;  %1652 = vmatpush1.bf16.msra.mxu1 %v4731_v0  ;;  %v4827_v63 = vld [vmem:[%s7077_s2 + $0x3e4] ss:$16 sps:$4 sm:$0xff]   ;;  %v4830_v0 = vld [vmem:[%s7077_s2 + $0x3ec] ss:$16 sps:$4 sm:$0xff]  }
  0x40   :  { %1492 = vmatprep.subr.bf16.mxu0 %v4737_v1  ;;  %1664 = vmatprep.subr.bf16.mxu1 %v4740_v2  ;;  %v4825_v1 = vld [vmem:[%s7077_s2 + $0x3e0] ss:$16 sps:$4 sm:$0xff]   ;;  %v4828_v2 = vld [vmem:[%s7077_s2 + $0x3e8] ss:$16 sps:$4 sm:$0xff]  }
  0x42   :  { %1482 = vmatmul.mubr.bf16.vlgmr.msra.gmra.mrb[0].mxu0 %v4732_v3  ;;  %1654 = vmatmul.mubr.bf16.vlgmr.msra.gmra.mrb[0].mxu1 %v4732_v3  ;;  %v4836_v3 = vld [vmem:[%s7077_s2 + $0x404] ss:$16 sps:$4 sm:$0xff]  }
  0x43   :  { %1493 = vmatpush1.bf16.msra.mxu0 %v4735_v4  ;;  %1665 = vmatpush1.bf16.msra.mxu1 %v4738_v5  ;;  %v4839_v4 = vld [vmem:[%s7077_s2 + $0x40c] ss:$16 sps:$4 sm:$0xff]   ;;  %v4831_v5 = vld [vmem:[%s7078_s0 + $0x8] ss:$28 sps:$4 sm:$0xff]  }
  0x44   :  { %1494 = vmatprep.subr.bf16.mxu0 %v4743_v6  ;;  %1666 = vmatprep.subr.bf16.mxu1 %v4746_v7  ;;  %v4834_v6 = vld [vmem:[%s7077_s2 + $0x400] ss:$16 sps:$4 sm:$0xff]   ;;  %v4837_v7 = vld [vmem:[%s7077_s2 + $0x408] ss:$16 sps:$4 sm:$0xff]  }
  0x45   :  { %1524 = vmatprep.mubr.bf16.mxu0 %v4833_v30  ;;  %1696 = vmatprep.mubr.bf16.mxu1 %v4833_v30  ;;  %v4875_v30 = vld [vmem:[%s7077_s2 + $0x4cc] ss:$16 sps:$4 sm:$0xff]  }
  0x47   :  { %1495 = vmatpush1.bf16.msra.mxu0 %v4741_v8  ;;  %1667 = vmatpush1.bf16.msra.mxu1 %v4744_v9  ;;  %v4842_v8 = vld [vmem:[%s7077_s2 + $0x424] ss:$16 sps:$4 sm:$0xff]   ;;  %v4845_v9 = vld [vmem:[%s7077_s2 + $0x42c] ss:$16 sps:$4 sm:$0xff]  }
  0x48   :  { %1496 = vmatprep.subr.bf16.mxu0 %v4749_v10  ;;  %1668 = vmatprep.subr.bf16.mxu1 %v4752_v11  ;;  %v4840_v10 = vld [vmem:[%s7077_s2 + $0x420] ss:$16 sps:$4 sm:$0xff]   ;;  %v4843_v11 = vld [vmem:[%s7077_s2 + $0x428] ss:$16 sps:$4 sm:$0xff]  }
  0x4b   :  { %1497 = vmatpush1.bf16.msra.mxu0 %v4747_v12  ;;  %1669 = vmatpush1.bf16.msra.mxu1 %v4750_v13  ;;  %v4932_v12 = vld [vmem:[%s7078_s0 + $0x14] ss:$28 sps:$4 sm:$0xff]  }
  0x4c   :  { %1498 = vmatprep.subr.bf16.mxu0 %v4755_v14  ;;  %1670 = vmatprep.subr.bf16.mxu1 %v4758_v15  ;;  %v4848_v13 = vld [vmem:[%s7077_s2 + $0x444] ss:$16 sps:$4 sm:$0xff]   ;;  %v4851_v14 = vld [vmem:[%s7077_s2 + $0x44c] ss:$16 sps:$4 sm:$0xff]   ;;  %v4846_v15 = vld [vmem:[%s7077_s2 + $0x440] ss:$16 sps:$4 sm:$0xff]  }
  0x4f   :  { %1499 = vmatpush1.bf16.msra.mxu0 %v4753_v16  ;;  %1671 = vmatpush1.bf16.msra.mxu1 %v4756_v17  ;;  %v4849_v16 = vld [vmem:[%s7077_s2 + $0x448] ss:$16 sps:$4 sm:$0xff]   ;;  %v4854_v17 = vld [vmem:[%s7077_s2 + $0x464] ss:$16 sps:$4 sm:$0xff]  }
  0x50   :  { %1500 = vmatprep.subr.bf16.mxu0 %v4761_v18  ;;  %1672 = vmatprep.subr.bf16.mxu1 %v4764_v19  ;;  %v4857_v18 = vld [vmem:[%s7077_s2 + $0x46c] ss:$16 sps:$4 sm:$0xff]   ;;  %v4852_v19 = vld [vmem:[%s7077_s2 + $0x460] ss:$16 sps:$4 sm:$0xff]  }
  0x53   :  { %1501 = vmatpush1.bf16.msra.mxu0 %v4759_v20  ;;  %1673 = vmatpush1.bf16.msra.mxu1 %v4762_v21  ;;  %v4855_v20 = vld [vmem:[%s7077_s2 + $0x468] ss:$16 sps:$4 sm:$0xff]   ;;  %v4860_v21 = vld [vmem:[%s7077_s2 + $0x484] ss:$16 sps:$4 sm:$0xff]  }
  0x54   :  { %1502 = vmatprep.subr.bf16.mxu0 %v4767_v22  ;;  %1674 = vmatprep.subr.bf16.mxu1 %v4770_v23  ;;  %v4863_v22 = vld [vmem:[%s7077_s2 + $0x48c] ss:$16 sps:$4 sm:$0xff]   ;;  %v4858_v23 = vld [vmem:[%s7077_s2 + $0x480] ss:$16 sps:$4 sm:$0xff]  }
  0x57   :  { %1503 = vmatpush1.bf16.msra.mxu0 %v4765_v24  ;;  %1675 = vmatpush1.bf16.msra.mxu1 %v4768_v25  ;;  %v4861_v24 = vld [vmem:[%s7077_s2 + $0x488] ss:$16 sps:$4 sm:$0xff]   ;;  %v4866_v25 = vld [vmem:[%s7077_s2 + $0x4a4] ss:$16 sps:$4 sm:$0xff]  }
  0x58   :  { %1504 = vmatprep.subr.bf16.mxu0 %v4773_v26  ;;  %1676 = vmatprep.subr.bf16.mxu1 %v4776_v27  ;;  %v4869_v26 = vld [vmem:[%s7077_s2 + $0x4ac] ss:$16 sps:$4 sm:$0xff]   ;;  %v4864_v27 = vld [vmem:[%s7077_s2 + $0x4a0] ss:$16 sps:$4 sm:$0xff]  }
  0x5b   :  { %1505 = vmatpush1.bf16.msra.mxu0 %v4771_v28  ;;  %1677 = vmatpush1.bf16.msra.mxu1 %v4774_v29  ;;  %v4867_v28 = vld [vmem:[%s7077_s2 + $0x4a8] ss:$16 sps:$4 sm:$0xff]   ;;  %v4872_v29 = vld [vmem:[%s7077_s2 + $0x4c4] ss:$16 sps:$4 sm:$0xff]  }
  0x5c   :  { %1506 = vmatprep.subr.bf16.mxu0 %v4779_v31  ;;  %1678 = vmatprep.subr.bf16.mxu1 %v4782_v32  ;;  %v4870_v31 = vld [vmem:[%s7077_s2 + $0x4c0] ss:$16 sps:$4 sm:$0xff]   ;;  %v4873_v32 = vld [vmem:[%s7077_s2 + $0x4c8] ss:$16 sps:$4 sm:$0xff]  }
  0x5f   :  { %1507 = vmatpush1.bf16.msra.mxu0 %v4777_v33  ;;  %1679 = vmatpush1.bf16.msra.mxu1 %v4780_v34  ;;  %v4878_v33 = vld [vmem:[%s7077_s2 + $0x4e4] ss:$16 sps:$4 sm:$0xff]   ;;  %v4881_v34 = vld [vmem:[%s7077_s2 + $0x4ec] ss:$16 sps:$4 sm:$0xff]  }
  0x60   :  { %1508 = vmatprep.subr.bf16.mxu0 %v4785_v35  ;;  %1680 = vmatprep.subr.bf16.mxu1 %v4788_v36  ;;  %v4876_v35 = vld [vmem:[%s7077_s2 + $0x4e0] ss:$16 sps:$4 sm:$0xff]   ;;  %v4879_v36 = vld [vmem:[%s7077_s2 + $0x4e8] ss:$16 sps:$4 sm:$0xff]  }
  0x63   :  { %1509 = vmatpush1.bf16.msra.mxu0 %v4783_v37  ;;  %1681 = vmatpush1.bf16.msra.mxu1 %v4786_v38  ;;  %v4884_v37 = vld [vmem:[%s7077_s2 + $0x504] ss:$16 sps:$4 sm:$0xff]   ;;  %v4887_v38 = vld [vmem:[%s7077_s2 + $0x50c] ss:$16 sps:$4 sm:$0xff]  }
  0x64   :  { %1510 = vmatprep.subr.bf16.mxu0 %v4791_v39  ;;  %1682 = vmatprep.subr.bf16.mxu1 %v4794_v40  ;;  %v4882_v39 = vld [vmem:[%s7077_s2 + $0x500] ss:$16 sps:$4 sm:$0xff]   ;;  %v4885_v40 = vld [vmem:[%s7077_s2 + $0x508] ss:$16 sps:$4 sm:$0xff]  }
  0x67   :  { %1511 = vmatpush1.bf16.msra.mxu0 %v4789_v41  ;;  %1683 = vmatpush1.bf16.msra.mxu1 %v4792_v42  ;;  %v4890_v41 = vld [vmem:[%s7077_s2 + $0x524] ss:$16 sps:$4 sm:$0xff]   ;;  %v4893_v42 = vld [vmem:[%s7077_s2 + $0x52c] ss:$16 sps:$4 sm:$0xff]  }
  0x68   :  { %1512 = vmatprep.subr.bf16.mxu0 %v4797_v43  ;;  %1684 = vmatprep.subr.bf16.mxu1 %v4800_v44  ;;  %v4888_v43 = vld [vmem:[%s7077_s2 + $0x520] ss:$16 sps:$4 sm:$0xff]   ;;  %v4891_v44 = vld [vmem:[%s7077_s2 + $0x528] ss:$16 sps:$4 sm:$0xff]  }
  0x6b   :  { %1513 = vmatpush1.bf16.msra.mxu0 %v4795_v45  ;;  %1685 = vmatpush1.bf16.msra.mxu1 %v4798_v46  ;;  %v4896_v45 = vld [vmem:[%s7077_s2 + $0x544] ss:$16 sps:$4 sm:$0xff]   ;;  %v4899_v46 = vld [vmem:[%s7077_s2 + $0x54c] ss:$16 sps:$4 sm:$0xff]  }
  0x6c   :  { %1514 = vmatprep.subr.bf16.mxu0 %v4803_v47  ;;  %1686 = vmatprep.subr.bf16.mxu1 %v4806_v48  ;;  %v4894_v47 = vld [vmem:[%s7077_s2 + $0x540] ss:$16 sps:$4 sm:$0xff]   ;;  %v4897_v48 = vld [vmem:[%s7077_s2 + $0x548] ss:$16 sps:$4 sm:$0xff]  }
  0x6f   :  { %1515 = vmatpush1.bf16.msra.mxu0 %v4801_v49  ;;  %1687 = vmatpush1.bf16.msra.mxu1 %v4804_v50  ;;  %v4902_v49 = vld [vmem:[%s7077_s2 + $0x564] ss:$16 sps:$4 sm:$0xff]   ;;  %v4905_v50 = vld [vmem:[%s7077_s2 + $0x56c] ss:$16 sps:$4 sm:$0xff]  }
  0x70   :  { %1516 = vmatprep.subr.bf16.mxu0 %v4809_v51  ;;  %1688 = vmatprep.subr.bf16.mxu1 %v4812_v52  ;;  %v4900_v51 = vld [vmem:[%s7077_s2 + $0x560] ss:$16 sps:$4 sm:$0xff]   ;;  %v4903_v52 = vld [vmem:[%s7077_s2 + $0x568] ss:$16 sps:$4 sm:$0xff]  }
  0x73   :  { %1517 = vmatpush1.bf16.msra.mxu0 %v4807_v53  ;;  %1689 = vmatpush1.bf16.msra.mxu1 %v4810_v54  ;;  %v4908_v53 = vld [vmem:[%s7077_s2 + $0x584] ss:$16 sps:$4 sm:$0xff]   ;;  %v4911_v54 = vld [vmem:[%s7077_s2 + $0x58c] ss:$16 sps:$4 sm:$0xff]  }
  0x74   :  { %1518 = vmatprep.subr.bf16.mxu0 %v4815_v55  ;;  %1690 = vmatprep.subr.bf16.mxu1 %v4818_v56  ;;  %v4906_v55 = vld [vmem:[%s7077_s2 + $0x580] ss:$16 sps:$4 sm:$0xff]   ;;  %v4909_v56 = vld [vmem:[%s7077_s2 + $0x588] ss:$16 sps:$4 sm:$0xff]  }
  0x77   :  { %1519 = vmatpush1.bf16.msra.mxu0 %v4813_v57  ;;  %1691 = vmatpush1.bf16.msra.mxu1 %v4816_v58  ;;  %v4914_v57 = vld [vmem:[%s7077_s2 + $0x5a4] ss:$16 sps:$4 sm:$0xff]   ;;  %v4917_v58 = vld [vmem:[%s7077_s2 + $0x5ac] ss:$16 sps:$4 sm:$0xff]  }
  0x78   :  { %1520 = vmatprep.subr.bf16.mxu0 %v4821_v59  ;;  %1692 = vmatprep.subr.bf16.mxu1 %v4824_v60  ;;  %v4912_v59 = vld [vmem:[%s7077_s2 + $0x5a0] ss:$16 sps:$4 sm:$0xff]   ;;  %v4915_v60 = vld [vmem:[%s7077_s2 + $0x5a8] ss:$16 sps:$4 sm:$0xff]  }
  0x7b   :  { %1521 = vmatpush1.bf16.msra.mxu0 %v4819_v61  ;;  %1693 = vmatpush1.bf16.msra.mxu1 %v4822_v62  ;;  %v4920_v61 = vld [vmem:[%s7077_s2 + $0x5c4] ss:$16 sps:$4 sm:$0xff]   ;;  %v4923_v62 = vld [vmem:[%s7077_s2 + $0x5cc] ss:$16 sps:$4 sm:$0xff]  }
  0x7c   :  { %1522 = vmatprep.subr.bf16.mxu0 %v4827_v63  ;;  %1694 = vmatprep.subr.bf16.mxu1 %v4830_v0  ;;  %v4918_v63 = vld [vmem:[%s7077_s2 + $0x5c0] ss:$16 sps:$4 sm:$0xff]   ;;  %v4921_v0 = vld [vmem:[%s7077_s2 + $0x5c8] ss:$16 sps:$4 sm:$0xff]  }
  0x7f   :  { %1523 = vmatpush1.bf16.msra.mxu0 %v4825_v1  ;;  %1695 = vmatpush1.bf16.msra.mxu1 %v4828_v2  ;;  %v4926_v1 = vld [vmem:[%s7077_s2 + $0x5e4] ss:$16 sps:$4 sm:$0xff]   ;;  %v4929_v2 = vld [vmem:[%s7077_s2 + $0x5ec] ss:$16 sps:$4 sm:$0xff]  }
  0x80   :  { %1535 = vmatprep.subr.bf16.mxu0 %v4836_v3  ;;  %1707 = vmatprep.subr.bf16.mxu1 %v4839_v4  ;;  %v4924_v3 = vld [vmem:[%s7077_s2 + $0x5e0] ss:$16 sps:$4 sm:$0xff]   ;;  %v4927_v4 = vld [vmem:[%s7077_s2 + $0x5e8] ss:$16 sps:$4 sm:$0xff]  }
  0x82   :  { %1525 = vmatmul.mubr.bf16.vlgmr.msra.gmra.mrb[0].mxu0 %v4831_v5  ;;  %1697 = vmatmul.mubr.bf16.vlgmr.msra.gmra.mrb[0].mxu1 %v4831_v5  ;;  %v4935_v5 = vld [vmem:[%s7077_s2 + $0x604] ss:$16 sps:$4 sm:$0xff]  }
  0x83   :  { %1536 = vmatpush1.bf16.msra.mxu0 %v4834_v6  ;;  %1708 = vmatpush1.bf16.msra.mxu1 %v4837_v7  ;;  %v4938_v6 = vld [vmem:[%s7077_s2 + $0x60c] ss:$16 sps:$4 sm:$0xff]  }
  0x84   :  { %1537 = vmatprep.subr.bf16.mxu0 %v4842_v8  ;;  %1709 = vmatprep.subr.bf16.mxu1 %v4845_v9  ;;  %v4930_v7 = vld [vmem:[%s7078_s0 + $0x10] ss:$28 sps:$4 sm:$0xff]   ;;  %v4936_v9 = vld [vmem:[%s7077_s2 + $0x608] ss:$16 sps:$4 sm:$0xff]  }
  0x85   :  { %1567 = vmatprep.mubr.bf16.mxu0 %v4932_v12  ;;  %1739 = vmatprep.mubr.bf16.mxu1 %v4932_v12  ;;  %v4933_v8 = vld [vmem:[%s7077_s2 + $0x600] ss:$16 sps:$4 sm:$0xff]  }
  0x86   :  { %v4939_v12 = vld [vmem:[%s7077_s2 + $0x620] ss:$16 sps:$4 sm:$0xff]  }
  0x87   :  { %1538 = vmatpush1.bf16.msra.mxu0 %v4840_v10  ;;  %1710 = vmatpush1.bf16.msra.mxu1 %v4843_v11  ;;  %v4941_v10 = vld [vmem:[%s7077_s2 + $0x624] ss:$16 sps:$4 sm:$0xff]   ;;  %v4944_v11 = vld [vmem:[%s7077_s2 + $0x62c] ss:$16 sps:$4 sm:$0xff]  }
  0x88   :  { %1539 = vmatprep.subr.bf16.mxu0 %v4848_v13  ;;  %1711 = vmatprep.subr.bf16.mxu1 %v4851_v14  ;;  %v4942_v13 = vld [vmem:[%s7077_s2 + $0x628] ss:$16 sps:$4 sm:$0xff]   ;;  %v4947_v14 = vld [vmem:[%s7077_s2 + $0x644] ss:$16 sps:$4 sm:$0xff]  }
  0x8b   :  { %1540 = vmatpush1.bf16.msra.mxu0 %v4846_v15  ;;  %1712 = vmatpush1.bf16.msra.mxu1 %v4849_v16  ;;  %v4950_v15 = vld [vmem:[%s7077_s2 + $0x64c] ss:$16 sps:$4 sm:$0xff]   ;;  %v5387_v16 = vmov 0  }
  0x8c   :  { %1541 = vmatprep.subr.bf16.mxu0 %v4854_v17  ;;  %1713 = vmatprep.subr.bf16.mxu1 %v4857_v18  ;;  %v4945_v17 = vld [vmem:[%s7077_s2 + $0x640] ss:$16 sps:$4 sm:$0xff]   ;;  %v4948_v18 = vld [vmem:[%s7077_s2 + $0x648] ss:$16 sps:$4 sm:$0xff]  }
  0x8f   :  { %1542 = vmatpush1.bf16.msra.mxu0 %v4852_v19  ;;  %1714 = vmatpush1.bf16.msra.mxu1 %v4855_v20  ;;  %v4953_v19 = vld [vmem:[%s7077_s2 + $0x664] ss:$16 sps:$4 sm:$0xff]   ;;  %v4956_v20 = vld [vmem:[%s7077_s2 + $0x66c] ss:$16 sps:$4 sm:$0xff]  }
  0x90   :  { %1543 = vmatprep.subr.bf16.mxu0 %v4860_v21  ;;  %1715 = vmatprep.subr.bf16.mxu1 %v4863_v22  ;;  %v4951_v21 = vld [vmem:[%s7077_s2 + $0x660] ss:$16 sps:$4 sm:$0xff]   ;;  %v4954_v22 = vld [vmem:[%s7077_s2 + $0x668] ss:$16 sps:$4 sm:$0xff]  }
  0x93   :  { %1544 = vmatpush1.bf16.msra.mxu0 %v4858_v23  ;;  %1716 = vmatpush1.bf16.msra.mxu1 %v4861_v24  ;;  %v4959_v23 = vld [vmem:[%s7077_s2 + $0x684] ss:$16 sps:$4 sm:$0xff]   ;;  %v4962_v24 = vld [vmem:[%s7077_s2 + $0x68c] ss:$16 sps:$4 sm:$0xff]  }
  0x94   :  { %1545 = vmatprep.subr.bf16.mxu0 %v4866_v25  ;;  %1717 = vmatprep.subr.bf16.mxu1 %v4869_v26  ;;  %v4957_v25 = vld [vmem:[%s7077_s2 + $0x680] ss:$16 sps:$4 sm:$0xff]   ;;  %v4960_v26 = vld [vmem:[%s7077_s2 + $0x688] ss:$16 sps:$4 sm:$0xff]  }
  0x97   :  { %1546 = vmatpush1.bf16.msra.mxu0 %v4864_v27  ;;  %1718 = vmatpush1.bf16.msra.mxu1 %v4867_v28  ;;  %v4965_v27 = vld [vmem:[%s7077_s2 + $0x6a4] ss:$16 sps:$4 sm:$0xff]   ;;  %v4968_v28 = vld [vmem:[%s7077_s2 + $0x6ac] ss:$16 sps:$4 sm:$0xff]  }
  0x98   :  { %1547 = vmatprep.subr.bf16.mxu0 %v4872_v29  ;;  %1719 = vmatprep.subr.bf16.mxu1 %v4875_v30  ;;  %v4963_v29 = vld [vmem:[%s7077_s2 + $0x6a0] ss:$16 sps:$4 sm:$0xff]   ;;  %v4966_v30 = vld [vmem:[%s7077_s2 + $0x6a8] ss:$16 sps:$4 sm:$0xff]  }
  0x9b   :  { %1548 = vmatpush1.bf16.msra.mxu0 %v4870_v31  ;;  %1720 = vmatpush1.bf16.msra.mxu1 %v4873_v32  ;;  %v4971_v31 = vld [vmem:[%s7077_s2 + $0x6c4] ss:$16 sps:$4 sm:$0xff]   ;;  %v4974_v32 = vld [vmem:[%s7077_s2 + $0x6cc] ss:$16 sps:$4 sm:$0xff]  }
  0x9c   :  { %1549 = vmatprep.subr.bf16.mxu0 %v4878_v33  ;;  %1721 = vmatprep.subr.bf16.mxu1 %v4881_v34  ;;  %v4969_v33 = vld [vmem:[%s7077_s2 + $0x6c0] ss:$16 sps:$4 sm:$0xff]   ;;  %v4972_v34 = vld [vmem:[%s7077_s2 + $0x6c8] ss:$16 sps:$4 sm:$0xff]  }
  0x9f   :  { %1550 = vmatpush1.bf16.msra.mxu0 %v4876_v35  ;;  %1722 = vmatpush1.bf16.msra.mxu1 %v4879_v36  ;;  %v4977_v35 = vld [vmem:[%s7077_s2 + $0x6e4] ss:$16 sps:$4 sm:$0xff]   ;;  %v4980_v36 = vld [vmem:[%s7077_s2 + $0x6ec] ss:$16 sps:$4 sm:$0xff]  }
  0xa0   :  { %1551 = vmatprep.subr.bf16.mxu0 %v4884_v37  ;;  %1723 = vmatprep.subr.bf16.mxu1 %v4887_v38  ;;  %v4975_v37 = vld [vmem:[%s7077_s2 + $0x6e0] ss:$16 sps:$4 sm:$0xff]   ;;  %v4978_v38 = vld [vmem:[%s7077_s2 + $0x6e8] ss:$16 sps:$4 sm:$0xff]  }
  0xa3   :  { %1552 = vmatpush1.bf16.msra.mxu0 %v4882_v39  ;;  %1724 = vmatpush1.bf16.msra.mxu1 %v4885_v40  ;;  %v4984_v39 = vld [vmem:[%s7079_s4 + $0x4] ss:$8 sps:$4 sm:$0xff]   ;;  %v4981_v40 = vld [vmem:[%s7078_s0 + $0x18] ss:$28 sps:$4 sm:$0xff]  }
  0xa4   :  { %1553 = vmatprep.subr.bf16.mxu0 %v4890_v41  ;;  %1725 = vmatprep.subr.bf16.mxu1 %v4893_v42  ;;  %v4982_v41 = vld [vmem:[%s7079_s4] ss:$8 sps:$4 sm:$0xff]   ;;  %v4987_v42 = vld [vmem:[%s7079_s4 + $0x14] ss:$8 sps:$4 sm:$0xff]  }
  0xa7   :  { %1554 = vmatpush1.bf16.msra.mxu0 %v4888_v43  ;;  %1726 = vmatpush1.bf16.msra.mxu1 %v4891_v44  ;;  %v4985_v43 = vld [vmem:[%s7079_s4 + $0x10] ss:$8 sps:$4 sm:$0xff]   ;;  %v4990_v44 = vld [vmem:[%s7079_s4 + $0x24] ss:$8 sps:$4 sm:$0xff]  }
  0xa8   :  { %1555 = vmatprep.subr.bf16.mxu0 %v4896_v45  ;;  %1727 = vmatprep.subr.bf16.mxu1 %v4899_v46  ;;  %v4988_v45 = vld [vmem:[%s7079_s4 + $0x20] ss:$8 sps:$4 sm:$0xff]   ;;  %v4993_v46 = vld [vmem:[%s7079_s4 + $0x34] ss:$8 sps:$4 sm:$0xff]  }
  0xab   :  { %1556 = vmatpush1.bf16.msra.mxu0 %v4894_v47  ;;  %1728 = vmatpush1.bf16.msra.mxu1 %v4897_v48  ;;  %v4991_v47 = vld [vmem:[%s7079_s4 + $0x30] ss:$8 sps:$4 sm:$0xff]   ;;  %v4996_v48 = vld [vmem:[%s7079_s4 + $0x44] ss:$8 sps:$4 sm:$0xff]  }
  0xac   :  { %1557 = vmatprep.subr.bf16.mxu0 %v4902_v49  ;;  %1729 = vmatprep.subr.bf16.mxu1 %v4905_v50  ;;  %v4994_v49 = vld [vmem:[%s7079_s4 + $0x40] ss:$8 sps:$4 sm:$0xff]   ;;  %v4999_v50 = vld [vmem:[%s7079_s4 + $0x54] ss:$8 sps:$4 sm:$0xff]  }
  0xaf   :  { %1558 = vmatpush1.bf16.msra.mxu0 %v4900_v51  ;;  %1730 = vmatpush1.bf16.msra.mxu1 %v4903_v52  ;;  %v4997_v51 = vld [vmem:[%s7079_s4 + $0x50] ss:$8 sps:$4 sm:$0xff]   ;;  %v5002_v52 = vld [vmem:[%s7079_s4 + $0x64] ss:$8 sps:$4 sm:$0xff]  }
  0xb0   :  { %1559 = vmatprep.subr.bf16.mxu0 %v4908_v53  ;;  %1731 = vmatprep.subr.bf16.mxu1 %v4911_v54  ;;  %v5000_v53 = vld [vmem:[%s7079_s4 + $0x60] ss:$8 sps:$4 sm:$0xff]   ;;  %v5005_v54 = vld [vmem:[%s7079_s4 + $0x74] ss:$8 sps:$4 sm:$0xff]  }
  0xb3   :  { %1560 = vmatpush1.bf16.msra.mxu0 %v4906_v55  ;;  %1732 = vmatpush1.bf16.msra.mxu1 %v4909_v56  ;;  %v5003_v55 = vld [vmem:[%s7079_s4 + $0x70] ss:$8 sps:$4 sm:$0xff]   ;;  %v5008_v56 = vld [vmem:[%s7079_s4 + $0x84] ss:$8 sps:$4 sm:$0xff]  }
  0xb4   :  { %1561 = vmatprep.subr.bf16.mxu0 %v4914_v57  ;;  %1733 = vmatprep.subr.bf16.mxu1 %v4917_v58  ;;  %v5006_v57 = vld [vmem:[%s7079_s4 + $0x80] ss:$8 sps:$4 sm:$0xff]   ;;  %v5011_v58 = vld [vmem:[%s7079_s4 + $0x94] ss:$8 sps:$4 sm:$0xff]  }
  0xb7   :  { %1562 = vmatpush1.bf16.msra.mxu0 %v4912_v59  ;;  %1734 = vmatpush1.bf16.msra.mxu1 %v4915_v60  ;;  %v5009_v59 = vld [vmem:[%s7079_s4 + $0x90] ss:$8 sps:$4 sm:$0xff]   ;;  %v5014_v60 = vld [vmem:[%s7079_s4 + $0xa4] ss:$8 sps:$4 sm:$0xff]  }
  0xb8   :  { %1563 = vmatprep.subr.bf16.mxu0 %v4920_v61  ;;  %1735 = vmatprep.subr.bf16.mxu1 %v4923_v62  ;;  %v5012_v61 = vld [vmem:[%s7079_s4 + $0xa0] ss:$8 sps:$4 sm:$0xff]   ;;  %v5017_v62 = vld [vmem:[%s7079_s4 + $0xb4] ss:$8 sps:$4 sm:$0xff]  }
  0xbb   :  { %1564 = vmatpush1.bf16.msra.mxu0 %v4918_v63  ;;  %1736 = vmatpush1.bf16.msra.mxu1 %v4921_v0  ;;  %v5015_v63 = vld [vmem:[%s7079_s4 + $0xb0] ss:$8 sps:$4 sm:$0xff]   ;;  %v5020_v0 = vld [vmem:[%s7079_s4 + $0xc4] ss:$8 sps:$4 sm:$0xff]  }
  0xbc   :  { %1565 = vmatprep.subr.bf16.mxu0 %v4926_v1  ;;  %1737 = vmatprep.subr.bf16.mxu1 %v4929_v2  ;;  %v5018_v1 = vld [vmem:[%s7079_s4 + $0xc0] ss:$8 sps:$4 sm:$0xff]   ;;  %v5023_v2 = vld [vmem:[%s7079_s4 + $0xd4] ss:$8 sps:$4 sm:$0xff]  }
  0xbf   :  { %1566 = vmatpush1.bf16.msra.mxu0 %v4924_v3  ;;  %1738 = vmatpush1.bf16.msra.mxu1 %v4927_v4  ;;  %v5021_v3 = vld [vmem:[%s7079_s4 + $0xd0] ss:$8 sps:$4 sm:$0xff]   ;;  %v5026_v4 = vld [vmem:[%s7079_s4 + $0xe4] ss:$8 sps:$4 sm:$0xff]  }
  0xc0   :  { %1578 = vmatprep.subr.bf16.mxu0 %v4935_v5  ;;  %1750 = vmatprep.subr.bf16.mxu1 %v4938_v6  ;;  %v5024_v5 = vld [vmem:[%s7079_s4 + $0xe0] ss:$8 sps:$4 sm:$0xff]   ;;  %v5029_v6 = vld [vmem:[%s7079_s4 + $0xf4] ss:$8 sps:$4 sm:$0xff]  }
  0xc2   :  { %1568 = vmatmul.mubr.bf16.vlgmr.msra.gmra.mrb[0].mxu0 %v4930_v7  ;;  %1740 = vmatmul.mubr.bf16.vlgmr.msra.gmra.mrb[0].mxu1 %v4930_v7  ;;  %v5027_v7 = vld [vmem:[%s7079_s4 + $0xf0] ss:$8 sps:$4 sm:$0xff]  }
  0xc3   :  { %1579 = vmatpush1.bf16.msra.mxu0 %v4933_v8  ;;  %1751 = vmatpush1.bf16.msra.mxu1 %v4936_v9  ;;  %v5032_v8 = vld [vmem:[%s7079_s4 + $0x104] ss:$8 sps:$4 sm:$0xff]   ;;  %v5057_v9 = vld [vmem:[%s7080_s6] ss:$16 sps:$4 sm:$0xff]  }
  0xc4   :  { %1580 = vmatprep.subr.bf16.mxu0 %v4941_v10  ;;  %1752 = vmatprep.subr.bf16.mxu1 %v4944_v11  ;;  %v5059_v10 = vld [vmem:[%s7080_s6 + $0x4] ss:$16 sps:$4 sm:$0xff]   ;;  %v5060_v11 = vld [vmem:[%s7080_s6 + $0x20] ss:$16 sps:$4 sm:$0xff]  }
  0xc5   :  { %1610 = vmatprep.mubr.bf16.mxu0 %v5387_v16  ;;  %1782 = vmatprep.mubr.bf16.mxu1 %v5387_v16 }
  0xc7   :  { %1581 = vmatpush1.bf16.msra.mxu0 %v4939_v12  ;;  %1753 = vmatpush1.bf16.msra.mxu1 %v4942_v13  ;;  %v5062_v12 = vld [vmem:[%s7080_s6 + $0x24] ss:$16 sps:$4 sm:$0xff]   ;;  %v273_v13 = vlaneseq }
  0xc8   :  { %1582 = vmatprep.subr.bf16.mxu0 %v4947_v14  ;;  %1754 = vmatprep.subr.bf16.mxu1 %v4950_v15 }
  0xc9   :  { %v6260_v14 = vshrl.u32 %v273_v13, 7  ;;  %v5072_v13 = vld [vmem:[%s7080_s6 + $0xa0] ss:$16 sps:$4 sm:$0xff]  }
  0xcb   :  { %1583 = vmatpush1.bf16.msra.mxu0 %v4945_v17  ;;  %1755 = vmatpush1.bf16.msra.mxu1 %v4948_v18  ;;  %v6263_v15 = vsub.s32 0, %v6260_v14  ;;  %v6266_v17 = vsub.s32 2, %v6260_v14  ;;  %v271_v18 = vld [vmem:[%s7081_s3] sm:$0xf] }
  0xcc   :  { %1584 = vmatprep.subr.bf16.mxu0 %v4953_v19  ;;  %1756 = vmatprep.subr.bf16.mxu1 %v4956_v20  ;;  %v6272_v19 = vsub.s32 1, %v6260_v14  ;;  %v6275_v20 = vsub.s32 3, %v6260_v14 }
  0xcf   :  { %1585 = vmatpush1.bf16.msra.mxu0 %v4951_v21  ;;  %1757 = vmatpush1.bf16.msra.mxu1 %v4954_v22  ;;  %v276_v21 = vrot.slane %v271_v18, %v6263_v15  ;;  %v284_v22 = vrot.slane %v271_v18, %v6266_v17 }
  0xd0   :  { %1586 = vmatprep.subr.bf16.mxu0 %v4959_v23  ;;  %1758 = vmatprep.subr.bf16.mxu1 %v4962_v24  ;;  %v280_v23 = vrot.slane %v271_v18, %v6272_v19  ;;  %v288_v24 = vrot.slane %v271_v18, %v6275_v20  ;;  %v5077_v18 = vld [vmem:[%s7080_s6 + $0xc4] ss:$16 sps:$4 sm:$0xff]  }
  0xd3   :  { %1587 = vmatpush1.bf16.msra.mxu0 %v4957_v25  ;;  %1759 = vmatpush1.bf16.msra.mxu1 %v4960_v26 }
  0xd4   :  { %1588 = vmatprep.subr.bf16.mxu0 %v4965_v27  ;;  %1760 = vmatprep.subr.bf16.mxu1 %v4968_v28 }
  0xd7   :  { %1589 = vmatpush1.bf16.msra.mxu0 %v4963_v29  ;;  %1761 = vmatpush1.bf16.msra.mxu1 %v4966_v30 }
  0xd8   :  { %1590 = vmatprep.subr.bf16.mxu0 %v4971_v31  ;;  %1762 = vmatprep.subr.bf16.mxu1 %v4974_v32 }
  0xdb   :  { %1591 = vmatpush1.bf16.msra.mxu0 %v4969_v33  ;;  %1763 = vmatpush1.bf16.msra.mxu1 %v4972_v34 }
  0xdc   :  { %1592 = vmatprep.subr.bf16.mxu0 %v4977_v35  ;;  %1764 = vmatprep.subr.bf16.mxu1 %v4980_v36 }
  0xdf   :  { %1593 = vmatpush1.bf16.msra.mxu0 %v4975_v37  ;;  %1765 = vmatpush1.bf16.msra.mxu1 %v4978_v38 }
  0xe0   :  { %2121 = vmatprep.subr.bf16.mxu0 %v4984_v39  ;;  %2434 = vmatprep.subr.bf16.mxu1 %v5059_v10  ;;  %v5071_v10 = vld [vmem:[%s7080_s6 + $0x84] ss:$16 sps:$4 sm:$0xff]  }
  0xe2   :  { %1611 = vmatmul.mubr.bf16.vlgmr.msra.gmra.mrb[0].mxu0 %v4981_v40  ;;  %1783 = vmatmul.mubr.bf16.vlgmr.msra.gmra.mrb[0].mxu1 %v4981_v40 }
  0xe3   :  { %2122 = vmatpush1.bf16.msra.mxu0 %v4982_v41  ;;  %2466 = vmatprep.mubr.bf16.mxu1 %v5387_v16 }
  0xe4   :  { %2123 = vmatprep.subr.bf16.mxu0 %v4987_v42  ;;  %2435 = vmatpush1.bf16.msra.mxu1 %v5057_v9  ;;  %v5066_v9 = vld [vmem:[%s7080_s6 + $0x60] ss:$16 sps:$4 sm:$0xff]  }
  0xe5   :  { %2436 = vmatprep.subr.bf16.mxu1 %v5062_v12  ;;  %v5074_v12 = vld [vmem:[%s7080_s6 + $0xa4] ss:$16 sps:$4 sm:$0xff]  }
  0xe7   :  { %2124 = vmatpush1.bf16.msra.mxu0 %v4985_v43 }
  0xe8   :  { %2125 = vmatprep.subr.bf16.mxu0 %v4990_v44  ;;  %2437 = vmatpush1.bf16.msra.mxu1 %v5060_v11  ;;  %v5069_v11 = vld [vmem:[%s7080_s6 + $0x80] ss:$16 sps:$4 sm:$0xff]  }
  0xeb   :  { %2126 = vmatpush1.bf16.msra.mxu0 %v4988_v45 }
  0xec   :  { %2127 = vmatprep.subr.bf16.mxu0 %v4993_v46 }
  0xef   :  { %2128 = vmatpush1.bf16.msra.mxu0 %v4991_v47 }
  0xf0   :  { %2129 = vmatprep.subr.bf16.mxu0 %v4996_v48 }
  0xf3   :  { %2130 = vmatpush1.bf16.msra.mxu0 %v4994_v49 }
  0xf4   :  { %2131 = vmatprep.subr.bf16.mxu0 %v4999_v50 }
  0xf7   :  { %2132 = vmatpush1.bf16.msra.mxu0 %v4997_v51 }
  0xf8   :  { %2133 = vmatprep.subr.bf16.mxu0 %v5002_v52 }
  0xfb   :  { %2134 = vmatpush1.bf16.msra.mxu0 %v5000_v53  ;;  %v5030_v53 = vld [vmem:[%s7079_s4 + $0x100] ss:$8 sps:$4 sm:$0xff]  }
  0xfc   :  { %2135 = vmatprep.subr.bf16.mxu0 %v5005_v54  ;;  %v5035_v54 = vld [vmem:[%s7079_s4 + $0x114] ss:$8 sps:$4 sm:$0xff]  }
  0xff   :  { %2136 = vmatpush1.bf16.msra.mxu0 %v5003_v55  ;;  %v5033_v55 = vld [vmem:[%s7079_s4 + $0x110] ss:$8 sps:$4 sm:$0xff]  }
 0x100   :  { %2137 = vmatprep.subr.bf16.mxu0 %v5008_v56  ;;  %v5038_v56 = vld [vmem:[%s7079_s4 + $0x124] ss:$8 sps:$4 sm:$0xff]  }
 0x103   :  { %2138 = vmatpush1.bf16.msra.mxu0 %v5006_v57  ;;  %v5036_v57 = vld [vmem:[%s7079_s4 + $0x120] ss:$8 sps:$4 sm:$0xff]  }
 0x104   :  { %2139 = vmatprep.subr.bf16.mxu0 %v5011_v58  ;;  %v5041_v58 = vld [vmem:[%s7079_s4 + $0x134] ss:$8 sps:$4 sm:$0xff]  }
 0x107   :  { %2140 = vmatpush1.bf16.msra.mxu0 %v5009_v59  ;;  %v5039_v59 = vld [vmem:[%s7079_s4 + $0x130] ss:$8 sps:$4 sm:$0xff]  }
 0x108   :  { %2141 = vmatprep.subr.bf16.mxu0 %v5014_v60  ;;  %v5044_v60 = vld [vmem:[%s7079_s4 + $0x144] ss:$8 sps:$4 sm:$0xff]  }
 0x10b   :  { %2142 = vmatpush1.bf16.msra.mxu0 %v5012_v61  ;;  %v5042_v61 = vld [vmem:[%s7079_s4 + $0x140] ss:$8 sps:$4 sm:$0xff]  }
 0x10c   :  { %2143 = vmatprep.subr.bf16.mxu0 %v5017_v62  ;;  %v5047_v62 = vld [vmem:[%s7079_s4 + $0x154] ss:$8 sps:$4 sm:$0xff]  }
 0x10f   :  { %2144 = vmatpush1.bf16.msra.mxu0 %v5015_v63  ;;  %v5045_v63 = vld [vmem:[%s7079_s4 + $0x150] ss:$8 sps:$4 sm:$0xff]  }
 0x110   :  { %2145 = vmatprep.subr.bf16.mxu0 %v5020_v0  ;;  %v5050_v0 = vld [vmem:[%s7079_s4 + $0x164] ss:$8 sps:$4 sm:$0xff]  }
 0x113   :  { %2146 = vmatpush1.bf16.msra.mxu0 %v5018_v1  ;;  %v5048_v1 = vld [vmem:[%s7079_s4 + $0x160] ss:$8 sps:$4 sm:$0xff]  }
 0x114   :  { %2147 = vmatprep.subr.bf16.mxu0 %v5023_v2  ;;  %v5053_v2 = vld [vmem:[%s7079_s4 + $0x174] ss:$8 sps:$4 sm:$0xff]  }
 0x117   :  { %2148 = vmatpush1.bf16.msra.mxu0 %v5021_v3  ;;  %v5051_v3 = vld [vmem:[%s7079_s4 + $0x170] ss:$8 sps:$4 sm:$0xff]  }
 0x118   :  { %2149 = vmatprep.subr.bf16.mxu0 %v5026_v4  ;;  %v5056_v4 = vld [vmem:[%s7079_s4 + $0x184] ss:$8 sps:$4 sm:$0xff]  }
 0x11b   :  { %2150 = vmatpush1.bf16.msra.mxu0 %v5024_v5  ;;  %v5054_v5 = vld [vmem:[%s7079_s4 + $0x180] ss:$8 sps:$4 sm:$0xff]  }
 0x11c   :  { %2151 = vmatprep.subr.bf16.mxu0 %v5029_v6  ;;  %v5065_v6 = vld [vmem:[%s7080_s6 + $0x44] ss:$16 sps:$4 sm:$0xff]  }
 0x11d   :  { %2438 = vmatprep.subr.bf16.mxu1 %v5065_v6  ;;  %v2214_v6 = vld [vmem:[%s7086_s1 + $0x8] sm:$0xff] }
 0x11f   :  { %2152 = vmatpush1.bf16.msra.mxu0 %v5027_v7  ;;  %v5063_v7 = vld [vmem:[%s7080_s6 + $0x40] ss:$16 sps:$4 sm:$0xff]  }
 0x120   :  { %2164 = vmatprep.subr.bf16.mxu0 %v5032_v8  ;;  %2439 = vmatpush1.bf16.msra.mxu1 %v5063_v7  ;;  %v5068_v8 = vld [vmem:[%s7080_s6 + $0x64] ss:$16 sps:$4 sm:$0xff]  }
 0x121   :  { %2440 = vmatprep.subr.bf16.mxu1 %v5068_v8 }
 0x124   :  { %2441 = vmatpush1.bf16.msra.mxu1 %v5066_v9 }
 0x125   :  { %2442 = vmatprep.subr.bf16.mxu1 %v5071_v10 }
 0x128   :  { %2443 = vmatpush1.bf16.msra.mxu1 %v5069_v11 }
 0x129   :  { %2444 = vmatprep.subr.bf16.mxu1 %v5074_v12  ;;  %v5081_v12 = vld [vmem:[%s7080_s6 + $0x8] ss:$16 sps:$4 sm:$0xff]  }
 0x12c   :  { %2445 = vmatpush1.bf16.msra.mxu1 %v5072_v13 }
 0x12d   :  { %2446 = vmatprep.subr.bf16.mxu1 %v5077_v18  ;;  %v5086_v18 = vld [vmem:[%s7080_s6 + $0x2c] ss:$16 sps:$4 sm:$0xff]  }
 0x1b5   :  { %v1612_v25 = vpop.f32.mrb[0].mxu0  ;;  %v1784_v26 = vpop.f32.mrb[0].mxu1 }
 0x1b6   :  { %v4571_v27 = vadd.f32 %v1612_v25, %v276_v21  ;;  %v4575_v28 = vadd.f32 %v1784_v26, %v284_v22  ;;  %v1614_v29 = vpop.f32.mrb[1].mxu0  ;;  %v1786_v30 = vpop.f32.mrb[1].mxu1  ;;  %v5108_v25 = vld [vmem:[%s7082_s8 + $0x8] ss:$28 sps:$4 sm:$0xff]  }
 0x1b7   :  { %v4572_v31 = vadd.f32 %v1614_v29, %v280_v23  ;;  %v4576_v32 = vadd.f32 %v1786_v30, %v288_v24  ;;  %v1616_v33 = vpop.f32.mrb[2].mxu0  ;;  %v1788_v34 = vpop.f32.mrb[2].mxu1  ;;  %v5110_v26 = vld [vmem:[%s7082_s8 + $0xc] ss:$28 sps:$4 sm:$0xff]   ;;  %v5122_v29 = vld [vmem:[%s7082_s8 + $0x7c] ss:$28 sps:$4 sm:$0xff]  }
 0x1b8   :  { %v4573_v35 = vadd.f32 %v1616_v33, %v276_v21  ;;  %v4577_v36 = vadd.f32 %v1788_v34, %v284_v22  ;;  %v1618_v37 = vpop.f32.mrb[3].mxu0  ;;  %v1790_v38 = vpop.f32.mrb[3].mxu1  ;;  %v1793_v41 = vmax.f32 %v4571_v27, 0.0  ;;  %v1795_v42 = vmax.f32 %v4575_v28, 0.0  ;;  %v5075_v21 = vld [vmem:[%s7080_s6 + $0xc0] ss:$16 sps:$4 sm:$0xff]  }
 0x1b9   :  { %v4574_v39 = vadd.f32 %v1618_v37, %v280_v23  ;;  %v4578_v40 = vadd.f32 %v1790_v38, %v288_v24  ;;  %v1794_v45 = vmax.f32 %v4572_v31, 0.0  ;;  %v1796_v46 = vmax.f32 %v4576_v32, 0.0  ;;  %v5080_v22 = vld [vmem:[%s7080_s6 + $0xe4] ss:$16 sps:$4 sm:$0xff]   ;;  %2447 = vmatpush1.bf16.msra.mxu1 %v5075_v21  ;;  %v5078_v23 = vld [vmem:[%s7080_s6 + $0xe0] ss:$16 sps:$4 sm:$0xff]  }
 0x1ba   :  { %v1797_v43 = vmax.f32 %v4573_v35, 0.0  ;;  %v1799_v44 = vmax.f32 %v4577_v36, 0.0  ;;  %2448 = vmatprep.subr.bf16.mxu1 %v5080_v22  ;;  %v5083_v24 = vld [vmem:[%s7080_s6 + $0xc] ss:$16 sps:$4 sm:$0xff]   ;;  %v5116_v28 = vld [vmem:[%s7082_s8 + $0x44] ss:$28 sps:$4 sm:$0xff]  }
 0x1bb   :  { %v1798_v47 = vmax.f32 %v4574_v39, 0.0  ;;  %v1800_v48 = vmax.f32 %v4578_v40, 0.0  ;;  %v5114_v27 = vld [vmem:[%s7082_s8 + $0x40] ss:$28 sps:$4 sm:$0xff]   ;;  %v5120_v30 = vld [vmem:[%s7082_s8 + $0x78] ss:$28 sps:$4 sm:$0xff]  }
 0x1bc   :  { %v1801_v49 = vpack.c.bf16 %v1797_v43, %v1793_v41  ;;  %v1803_v50 = vpack.c.bf16 %v1799_v44, %v1795_v42  ;;  %v5128_v31 = vld [vmem:[%s7082_s8 + $0xb4] ss:$28 sps:$4 sm:$0xff]   ;;  %v5134_v33 = vld [vmem:[%s7082_s8 + $0xec] ss:$28 sps:$4 sm:$0xff]   ;;  %v5140_v35 = vld [vmem:[%s7082_s8 + $0x124] ss:$28 sps:$4 sm:$0xff]  }
 0x1bd   :  { %v1802_v51 = vpack.c.bf16 %v1798_v47, %v1794_v45  ;;  %v1804_v52 = vpack.c.bf16 %v1800_v48, %v1796_v46  ;;  %2449 = vmatpush1.bf16.msra.mxu1 %v5078_v23  ;;  %v5126_v32 = vld [vmem:[%s7082_s8 + $0xb0] ss:$28 sps:$4 sm:$0xff]   ;;  %v5132_v34 = vld [vmem:[%s7082_s8 + $0xe8] ss:$28 sps:$4 sm:$0xff]   ;;  %v5138_v36 = vld [vmem:[%s7082_s8 + $0x120] ss:$28 sps:$4 sm:$0xff]  }
 0x1be   :  { %2477 = vmatprep.subr.bf16.mxu1 %v5083_v24  ;;  %v5146_v37 = vld [vmem:[%s7082_s8 + $0x15c] ss:$28 sps:$4 sm:$0xff]   ;;  %v5152_v39 = vld [vmem:[%s7082_s8 + $0x194] ss:$28 sps:$4 sm:$0xff]   ;;  %v5158_v41 = vld [vmem:[%s7082_s8 + $0x1cc] ss:$28 sps:$4 sm:$0xff]  }
 0x1bf   :  { %2153 = vmatprep.mubr.bf16.mxu0 %v1802_v51  ;;  %v5144_v38 = vld [vmem:[%s7082_s8 + $0x158] ss:$28 sps:$4 sm:$0xff]   ;;  %v5150_v40 = vld [vmem:[%s7082_s8 + $0x190] ss:$28 sps:$4 sm:$0xff]   ;;  %v5156_v42 = vld [vmem:[%s7082_s8 + $0x1c8] ss:$28 sps:$4 sm:$0xff]  }
 0x1c0   :  { %2154 = vmatmul.mubr.bf16.vlgmr.msra.gmra.mrb[4].mxu0 %v1801_v49  ;;  %v5164_v43 = vld [vmem:[%s7082_s8 + $0x204] ss:$28 sps:$4 sm:$0xff]   ;;  %v5170_v45 = vld [vmem:[%s7082_s8 + $0x23c] ss:$28 sps:$4 sm:$0xff]   ;;  %v5176_v47 = vld [vmem:[%s7082_s8 + $0x274] ss:$28 sps:$4 sm:$0xff]  }
 0x1c1   :  { %2165 = vmatpush1.bf16.msra.mxu0 %v5030_v53  ;;  %4337 = vmatprep.mubr.msk.bf16.mxu0 %vm2117_vm0, %v1804_v52  ;;  %v5162_v44 = vld [vmem:[%s7082_s8 + $0x200] ss:$28 sps:$4 sm:$0xff]   ;;  %v5168_v46 = vld [vmem:[%s7082_s8 + $0x238] ss:$28 sps:$4 sm:$0xff]   ;;  %v5174_v48 = vld [vmem:[%s7082_s8 + $0x270] ss:$28 sps:$4 sm:$0xff]  }
 0x1c2   :  { %2166 = vmatprep.subr.bf16.mxu0 %v5035_v54  ;;  %v5182_v49 = vld [vmem:[%s7082_s8 + $0x2ac] ss:$28 sps:$4 sm:$0xff]   ;;  %v5188_v51 = vld [vmem:[%s7082_s8 + $0x2e4] ss:$28 sps:$4 sm:$0xff]  }
 0x1c3   :  { %v5186_v52 = vld [vmem:[%s7082_s8 + $0x2e0] ss:$28 sps:$4 sm:$0xff]   ;;  %v5084_v21 = vld [vmem:[%s7080_s6 + $0x28] ss:$16 sps:$4 sm:$0xff]  }
 0x1c4   :  { %v1855_v53 = vld [vmem:[%s7083_s5] sm:$0x3]  ;;  %v5089_v22 = vld [vmem:[%s7080_s6 + $0x4c] ss:$16 sps:$4 sm:$0xff]   ;;  %v5087_v23 = vld [vmem:[%s7080_s6 + $0x48] ss:$16 sps:$4 sm:$0xff]  }
 0x1c5   :  { %2167 = vmatpush1.bf16.msra.mxu0 %v5033_v55  ;;  %v1860_v54 = vrot.slane %v1855_v53, %v6263_v15  ;;  %v1864_v55 = vrot.slane %v1855_v53, %v6272_v19  ;;  %v5092_v24 = vld [vmem:[%s7080_s6 + $0x6c] ss:$16 sps:$4 sm:$0xff]   ;;  %v5159_v53 = vld [vmem:[%s7082_s8 + $0x1f8] ss:$28 sps:$4 sm:$0xff]  }
 0x1c6   :  { %2168 = vmatprep.subr.bf16.mxu0 %v5038_v56 }
 0x1c9   :  { %2169 = vmatpush1.bf16.msra.mxu0 %v5036_v57 }
 0x1ca   :  { %2170 = vmatprep.subr.bf16.mxu0 %v5041_v58 }
 0x1cd   :  { %2171 = vmatpush1.bf16.msra.mxu0 %v5039_v59 }
 0x1ce   :  { %2172 = vmatprep.subr.bf16.mxu0 %v5044_v60 }
 0x1d1   :  { %2173 = vmatpush1.bf16.msra.mxu0 %v5042_v61 }
 0x1d2   :  { %2174 = vmatprep.subr.bf16.mxu0 %v5047_v62 }
 0x1d5   :  { %2175 = vmatpush1.bf16.msra.mxu0 %v5045_v63 }
 0x1d6   :  { %2176 = vmatprep.subr.bf16.mxu0 %v5050_v0 }
 0x1d9   :  { %2177 = vmatpush1.bf16.msra.mxu0 %v5048_v1 }
 0x1da   :  { %2178 = vmatprep.subr.bf16.mxu0 %v5053_v2 }
 0x1dd   :  { %2179 = vmatpush1.bf16.msra.mxu0 %v5051_v3 }
 0x1de   :  { %2180 = vmatprep.subr.bf16.mxu0 %v5056_v4  ;;  %v2213_v4 = vld [vmem:[%s7086_s1] sm:$0xff] }
 0x1e1   :  { %2181 = vmatpush1.bf16.msra.mxu0 %v5054_v5 }
 0x1e2   :  { %3758 = vmatprep.subr.bf16.mxu0 %v5110_v26  ;;  %v5095_v26 = vld [vmem:[%s7080_s6 + $0x8c] ss:$16 sps:$4 sm:$0xff]  }
 0x1e4   :  { %2197 = vmatmul.mubr.bf16.vlgmr.msra.gmra.mrb[4].mxu0 %v1803_v50  ;;  %v5180_v50 = vld [vmem:[%s7082_s8 + $0x2a8] ss:$28 sps:$4 sm:$0xff]  }
 0x1e5   :  { %3759 = vmatpush1.bf16.msra.mxu0 %v5108_v25  ;;  %v5090_v25 = vld [vmem:[%s7080_s6 + $0x68] ss:$16 sps:$4 sm:$0xff]  }
 0x1e6   :  { %3760 = vmatprep.subr.bf16.mxu0 %v5116_v28  ;;  %v5098_v28 = vld [vmem:[%s7080_s6 + $0xac] ss:$16 sps:$4 sm:$0xff]  }
 0x1e9   :  { %3761 = vmatpush1.bf16.msra.mxu0 %v5114_v27  ;;  %v5093_v27 = vld [vmem:[%s7080_s6 + $0x88] ss:$16 sps:$4 sm:$0xff]  }
 0x1ea   :  { %3762 = vmatprep.subr.bf16.mxu0 %v5122_v29  ;;  %v5096_v29 = vld [vmem:[%s7080_s6 + $0xa8] ss:$16 sps:$4 sm:$0xff]  }
 0x1ed   :  { %3763 = vmatpush1.bf16.msra.mxu0 %v5120_v30  ;;  %v5101_v30 = vld [vmem:[%s7080_s6 + $0xcc] ss:$16 sps:$4 sm:$0xff]  }
 0x1ee   :  { %3764 = vmatprep.subr.bf16.mxu0 %v5128_v31  ;;  %v5099_v31 = vld [vmem:[%s7080_s6 + $0xc8] ss:$16 sps:$4 sm:$0xff]  }
 0x1f1   :  { %3765 = vmatpush1.bf16.msra.mxu0 %v5126_v32  ;;  %v5104_v32 = vld [vmem:[%s7080_s6 + $0xec] ss:$16 sps:$4 sm:$0xff]  }
 0x1f2   :  { %3766 = vmatprep.subr.bf16.mxu0 %v5134_v33  ;;  %v5102_v33 = vld [vmem:[%s7080_s6 + $0xe8] ss:$16 sps:$4 sm:$0xff]  }
 0x1f5   :  { %3767 = vmatpush1.bf16.msra.mxu0 %v5132_v34  ;;  %v5107_v34 = vld [vmem:[%s7082_s8 + $0x4] ss:$28 sps:$4 sm:$0xff]  }
 0x1f6   :  { %3768 = vmatprep.subr.bf16.mxu0 %v5140_v35  ;;  %v5105_v35 = vld [vmem:[%s7082_s8] ss:$28 sps:$4 sm:$0xff]  }
 0x1f9   :  { %3769 = vmatpush1.bf16.msra.mxu0 %v5138_v36  ;;  %v5113_v36 = vld [vmem:[%s7082_s8 + $0x3c] ss:$28 sps:$4 sm:$0xff]  }
 0x1fa   :  { %3770 = vmatprep.subr.bf16.mxu0 %v5146_v37  ;;  %v5111_v37 = vld [vmem:[%s7082_s8 + $0x38] ss:$28 sps:$4 sm:$0xff]  }
 0x1fd   :  { %3771 = vmatpush1.bf16.msra.mxu0 %v5144_v38  ;;  %v5119_v38 = vld [vmem:[%s7082_s8 + $0x74] ss:$28 sps:$4 sm:$0xff]  }
 0x1fe   :  { %3772 = vmatprep.subr.bf16.mxu0 %v5152_v39  ;;  %v5117_v39 = vld [vmem:[%s7082_s8 + $0x70] ss:$28 sps:$4 sm:$0xff]  }
 0x201   :  { %3773 = vmatpush1.bf16.msra.mxu0 %v5150_v40  ;;  %v5125_v40 = vld [vmem:[%s7082_s8 + $0xac] ss:$28 sps:$4 sm:$0xff]  }
 0x202   :  { %3774 = vmatprep.subr.bf16.mxu0 %v5158_v41  ;;  %v5123_v41 = vld [vmem:[%s7082_s8 + $0xa8] ss:$28 sps:$4 sm:$0xff]  }
 0x205   :  { %3775 = vmatpush1.bf16.msra.mxu0 %v5156_v42  ;;  %v5131_v42 = vld [vmem:[%s7082_s8 + $0xe4] ss:$28 sps:$4 sm:$0xff]  }
 0x206   :  { %3776 = vmatprep.subr.bf16.mxu0 %v5164_v43  ;;  %v5129_v43 = vld [vmem:[%s7082_s8 + $0xe0] ss:$28 sps:$4 sm:$0xff]  }
 0x209   :  { %3777 = vmatpush1.bf16.msra.mxu0 %v5162_v44  ;;  %v5137_v44 = vld [vmem:[%s7082_s8 + $0x11c] ss:$28 sps:$4 sm:$0xff]  }
 0x20a   :  { %3778 = vmatprep.subr.bf16.mxu0 %v5170_v45  ;;  %v5135_v45 = vld [vmem:[%s7082_s8 + $0x118] ss:$28 sps:$4 sm:$0xff]  }
 0x20d   :  { %3779 = vmatpush1.bf16.msra.mxu0 %v5168_v46  ;;  %v5143_v46 = vld [vmem:[%s7082_s8 + $0x154] ss:$28 sps:$4 sm:$0xff]  }
 0x20e   :  { %3780 = vmatprep.subr.bf16.mxu0 %v5176_v47  ;;  %v5141_v47 = vld [vmem:[%s7082_s8 + $0x150] ss:$28 sps:$4 sm:$0xff]  }
 0x211   :  { %3781 = vmatpush1.bf16.msra.mxu0 %v5174_v48  ;;  %v5149_v48 = vld [vmem:[%s7082_s8 + $0x18c] ss:$28 sps:$4 sm:$0xff]  }
 0x212   :  { %3782 = vmatprep.subr.bf16.mxu0 %v5182_v49  ;;  %v5147_v49 = vld [vmem:[%s7082_s8 + $0x188] ss:$28 sps:$4 sm:$0xff]  }
 0x215   :  { %3783 = vmatpush1.bf16.msra.mxu0 %v5180_v50  ;;  %v5155_v50 = vld [vmem:[%s7082_s8 + $0x1c4] ss:$28 sps:$4 sm:$0xff]  }
 0x216   :  { %3784 = vmatprep.subr.bf16.mxu0 %v5188_v51  ;;  %v5153_v51 = vld [vmem:[%s7082_s8 + $0x1c0] ss:$28 sps:$4 sm:$0xff]  }
 0x219   :  { %3785 = vmatpush1.bf16.msra.mxu0 %v5186_v52  ;;  %v5161_v52 = vld [vmem:[%s7082_s8 + $0x1fc] ss:$28 sps:$4 sm:$0xff]  }
 0x2b7   :  { %v2198_v56 = vpop.f32.mrb[4].mxu0 }
 0x2b8   :  { %v4579_v57 = vadd.f32 %v2198_v56, %v1860_v54  ;;  %v2200_v58 = vpop.f32.mrb[5].mxu0  ;;  %v5173_v56 = vld [vmem:[%s7082_s8 + $0x26c] ss:$28 sps:$4 sm:$0xff]  }
 0x2b9   :  { %v4580_v59 = vadd.f32 %v2200_v58, %v1864_v55  ;;  %v2202_v60 = vpop.f32.mrb[6].mxu0  ;;  %v5179_v58 = vld [vmem:[%s7082_s8 + $0x2a4] ss:$28 sps:$4 sm:$0xff]  }
 0x2ba   :  { %4040 = vst [vmem:[%s7084_s11] sm:$0xff] %v4579_v57  ;;  %v4581_v61 = vadd.f32 %v2202_v60, %v1860_v54  ;;  %v2204_v62 = vpop.f32.mrb[7].mxu0  ;;  %v5167_v54 = vld [vmem:[%s7082_s8 + $0x234] ss:$28 sps:$4 sm:$0xff]   ;;  %v5185_v60 = vld [vmem:[%s7082_s8 + $0x2dc] ss:$28 sps:$4 sm:$0xff]  }
 0x2bb   :  { %v2207_v63 = vmul.f32 0.5, %v4580_v59  ;;  %4042 = vst [vmem:[%s7085_s12] sm:$0xff] %v4580_v59  ;;  %v4582_v0 = vadd.f32 %v2204_v62, %v1864_v55  ;;  %v5165_v55 = vld [vmem:[%s7082_s8 + $0x230] ss:$28 sps:$4 sm:$0xff]   ;;  %v5177_v59 = vld [vmem:[%s7082_s8 + $0x2a0] ss:$28 sps:$4 sm:$0xff]  }
 0x2bc   :  { %4041 = vst [vmem:[%s7084_s11 + $0x8] sm:$0xff] %v4581_v61  ;;  %v5191_v62 = vld [vmem:[%s7082_s8 + $0x314] ss:$28 sps:$4 sm:$0xff]  }
 0x2bd   :  { %v2209_v1 = vmul.f32 1.442695, %v2207_v63  ;;  %v2208_v2 = vmul.f32 0.5, %v4582_v0  ;;  %4043 = vst [vmem:[%s7085_s12 + $0x8] sm:$0xff] %v4582_v0  ;;  %v5194_v63 = vld [vmem:[%s7082_s8 + $0x31c] ss:$28 sps:$4 sm:$0xff]  }
 0x2be   :  { %v5189_v0 = vld [vmem:[%s7082_s8 + $0x310] ss:$28 sps:$4 sm:$0xff]   ;;  %3786 = vmatprep.subr.bf16.mxu0 %v5194_v63 }
 0x2bf   :  { %5355 = vpow2.f32 %v2209_v1  ;;  %v2211_v3 = vmul.f32 1.442695, %v2208_v2  ;;  %v5192_v1 = vld [vmem:[%s7082_s8 + $0x318] ss:$28 sps:$4 sm:$0xff]   ;;  %v5197_v2 = vld [vmem:[%s7082_s8 + $0x34c] ss:$28 sps:$4 sm:$0xff]  }
 0x2c0   :  { %3787 = vmatpush1.bf16.msra.mxu0 %v5192_v1  ;;  %v5248_v63 = vld [vmem:[%s7082_s8 + $0x514] ss:$28 sps:$4 sm:$0xff]  }
 0x2c1   :  { %5357 = vpow2.f32 %v2211_v3  ;;  %v5200_v3 = vld [vmem:[%s7082_s8 + $0x354] ss:$28 sps:$4 sm:$0xff]  }
 0x2c2   :  { %3788 = vmatprep.subr.bf16.mxu0 %v5200_v3 }
 0x2c9   :  { %v5356_v5 = vpop.eup %5355 }
 0x2ca   :  { %v2215_v7 = vmul.f32 %v5356_v5, %v2213_v4  ;;  %v5195_v4 = vld [vmem:[%s7082_s8 + $0x348] ss:$28 sps:$4 sm:$0xff]   ;;  %v5198_v5 = vld [vmem:[%s7082_s8 + $0x350] ss:$28 sps:$4 sm:$0xff]  }
 0x2cb   :  { %v5358_v8 = vpop.eup %5357  ;;  %3789 = vmatpush1.bf16.msra.mxu0 %v5198_v5  ;;  %v5243_v5 = vld [vmem:[%s7082_s8 + $0x508] ss:$28 sps:$4 sm:$0xff]  }
 0x2cc   :  { %v2216_v9 = vmul.f32 %v5358_v8, %v2214_v6  ;;  %v2217_v10 = vadd.f32 %v4579_v57, %v2215_v7  ;;  %v5171_v57 = vld [vmem:[%s7082_s8 + $0x268] ss:$28 sps:$4 sm:$0xff]   ;;  %v6642_v8 = vld [vmem:[%s7087_s7] sm:$0xf] }
 0x2cd   :  { %v5203_v6 = vld [vmem:[%s7082_s8 + $0x384] ss:$28 sps:$4 sm:$0xff]   ;;  %v5206_v7 = vld [vmem:[%s7082_s8 + $0x38c] ss:$28 sps:$4 sm:$0xff]  }
 0x2ce   :  { %v2218_v11 = vadd.f32 %v4581_v61, %v2216_v9  ;;  %v5183_v61 = vld [vmem:[%s7082_s8 + $0x2d8] ss:$28 sps:$4 sm:$0xff]   ;;  %3801 = vmatprep.subr.bf16.mxu0 %v5206_v7  ;;  %v2257_v9 = vrot.slane %v6642_v8, %v6263_v15 }
 0x2d0   :  { %v2219_v13 = vpack.c.bf16 %v2218_v11, %v2217_v10  ;;  %v2261_v10 = vrot.slane %v6642_v8, %v6272_v19 }
 0x2d2   :  { %2467 = vmatmul.mubr.bf16.vlgmr.msra.gmra.mrb[4].mxu1 %v2219_v13 }
 0x2d3   :  { %2478 = vmatpush1.bf16.msra.mxu1 %v5081_v12  ;;  %2509 = vmatprep.mubr.bf16.mxu1 %v5387_v16 }
 0x2d4   :  { %2479 = vmatprep.subr.bf16.mxu1 %v5086_v18 }
 0x2d7   :  { %2480 = vmatpush1.bf16.msra.mxu1 %v5084_v21 }
 0x2d8   :  { %2481 = vmatprep.subr.bf16.mxu1 %v5089_v22 }
 0x2db   :  { %2482 = vmatpush1.bf16.msra.mxu1 %v5087_v23 }
 0x2dc   :  { %2483 = vmatprep.subr.bf16.mxu1 %v5092_v24 }
 0x2df   :  { %2484 = vmatpush1.bf16.msra.mxu1 %v5090_v25 }
 0x2e0   :  { %2485 = vmatprep.subr.bf16.mxu1 %v5095_v26 }
 0x2e3   :  { %2486 = vmatpush1.bf16.msra.mxu1 %v5093_v27 }
 0x2e4   :  { %2487 = vmatprep.subr.bf16.mxu1 %v5098_v28 }
 0x2e7   :  { %2488 = vmatpush1.bf16.msra.mxu1 %v5096_v29 }
 0x2e8   :  { %2489 = vmatprep.subr.bf16.mxu1 %v5101_v30 }
 0x2eb   :  { %2490 = vmatpush1.bf16.msra.mxu1 %v5099_v31  ;;  %v5201_v31 = vld [vmem:[%s7082_s8 + $0x380] ss:$28 sps:$4 sm:$0xff]  }
 0x2ec   :  { %2491 = vmatprep.subr.bf16.mxu1 %v5104_v32  ;;  %v5204_v32 = vld [vmem:[%s7082_s8 + $0x388] ss:$28 sps:$4 sm:$0xff]  }
 0x2ef   :  { %2492 = vmatpush1.bf16.msra.mxu1 %v5102_v33  ;;  %v5209_v33 = vld [vmem:[%s7082_s8 + $0x3bc] ss:$28 sps:$4 sm:$0xff]  }
 0x2f0   :  { %3672 = vmatprep.subr.bf16.mxu1 %v5107_v34  ;;  %v5212_v34 = vld [vmem:[%s7082_s8 + $0x3c4] ss:$28 sps:$4 sm:$0xff]  }
 0x2f2   :  { %2510 = vmatmul.mubr.bf16.vlgmr.msra.gmra.mrb[8].mxu1 %v2219_v13 }
 0x2f3   :  { %3673 = vmatpush1.bf16.msra.mxu1 %v5105_v35  ;;  %v5207_v35 = vld [vmem:[%s7082_s8 + $0x3b8] ss:$28 sps:$4 sm:$0xff]  }
 0x2f4   :  { %3674 = vmatprep.subr.bf16.mxu1 %v5113_v36  ;;  %v5210_v36 = vld [vmem:[%s7082_s8 + $0x3c0] ss:$28 sps:$4 sm:$0xff]  }
 0x2f7   :  { %3675 = vmatpush1.bf16.msra.mxu1 %v5111_v37  ;;  %v5215_v37 = vld [vmem:[%s7082_s8 + $0x3f4] ss:$28 sps:$4 sm:$0xff]  }
 0x2f8   :  { %3676 = vmatprep.subr.bf16.mxu1 %v5119_v38  ;;  %v5218_v38 = vld [vmem:[%s7082_s8 + $0x3fc] ss:$28 sps:$4 sm:$0xff]  }
 0x2fb   :  { %3677 = vmatpush1.bf16.msra.mxu1 %v5117_v39  ;;  %v5213_v39 = vld [vmem:[%s7082_s8 + $0x3f0] ss:$28 sps:$4 sm:$0xff]  }
 0x2fc   :  { %3678 = vmatprep.subr.bf16.mxu1 %v5125_v40  ;;  %v5216_v40 = vld [vmem:[%s7082_s8 + $0x3f8] ss:$28 sps:$4 sm:$0xff]  }
 0x2ff   :  { %3679 = vmatpush1.bf16.msra.mxu1 %v5123_v41  ;;  %v5221_v41 = vld [vmem:[%s7082_s8 + $0x42c] ss:$28 sps:$4 sm:$0xff]  }
 0x300   :  { %3680 = vmatprep.subr.bf16.mxu1 %v5131_v42  ;;  %v5224_v42 = vld [vmem:[%s7082_s8 + $0x434] ss:$28 sps:$4 sm:$0xff]  }
 0x303   :  { %3681 = vmatpush1.bf16.msra.mxu1 %v5129_v43  ;;  %v5219_v43 = vld [vmem:[%s7082_s8 + $0x428] ss:$28 sps:$4 sm:$0xff]  }
 0x304   :  { %3682 = vmatprep.subr.bf16.mxu1 %v5137_v44  ;;  %v5222_v44 = vld [vmem:[%s7082_s8 + $0x430] ss:$28 sps:$4 sm:$0xff]  }
 0x307   :  { %3683 = vmatpush1.bf16.msra.mxu1 %v5135_v45  ;;  %v5227_v45 = vld [vmem:[%s7082_s8 + $0x464] ss:$28 sps:$4 sm:$0xff]  }
 0x308   :  { %3684 = vmatprep.subr.bf16.mxu1 %v5143_v46  ;;  %v5230_v46 = vld [vmem:[%s7082_s8 + $0x46c] ss:$28 sps:$4 sm:$0xff]  }
 0x30b   :  { %3685 = vmatpush1.bf16.msra.mxu1 %v5141_v47  ;;  %v5225_v47 = vld [vmem:[%s7082_s8 + $0x460] ss:$28 sps:$4 sm:$0xff]  }
 0x30c   :  { %3686 = vmatprep.subr.bf16.mxu1 %v5149_v48  ;;  %v5228_v48 = vld [vmem:[%s7082_s8 + $0x468] ss:$28 sps:$4 sm:$0xff]  }
 0x30f   :  { %3687 = vmatpush1.bf16.msra.mxu1 %v5147_v49  ;;  %v5233_v49 = vld [vmem:[%s7082_s8 + $0x49c] ss:$28 sps:$4 sm:$0xff]  }
 0x310   :  { %3688 = vmatprep.subr.bf16.mxu1 %v5155_v50  ;;  %v5236_v50 = vld [vmem:[%s7082_s8 + $0x4a4] ss:$28 sps:$4 sm:$0xff]  }
 0x313   :  { %3689 = vmatpush1.bf16.msra.mxu1 %v5153_v51  ;;  %v5231_v51 = vld [vmem:[%s7082_s8 + $0x498] ss:$28 sps:$4 sm:$0xff]  }
 0x314   :  { %3690 = vmatprep.subr.bf16.mxu1 %v5161_v52  ;;  %v5234_v52 = vld [vmem:[%s7082_s8 + $0x4a0] ss:$28 sps:$4 sm:$0xff]  }
 0x317   :  { %3691 = vmatpush1.bf16.msra.mxu1 %v5159_v53  ;;  %v2265_v53 = vrot.slane %v6642_v8, %v6266_v17 }
 0x318   :  { %3692 = vmatprep.subr.bf16.mxu1 %v5167_v54  ;;  %v5239_v54 = vld [vmem:[%s7082_s8 + $0x4d4] ss:$28 sps:$4 sm:$0xff]  }
 0x31b   :  { %3693 = vmatpush1.bf16.msra.mxu1 %v5165_v55  ;;  %v5242_v55 = vld [vmem:[%s7082_s8 + $0x4dc] ss:$28 sps:$4 sm:$0xff]  }
 0x31c   :  { %3694 = vmatprep.subr.bf16.mxu1 %v5173_v56  ;;  %v2269_v56 = vrot.slane %v6642_v8, %v6275_v20 }
 0x31f   :  { %3695 = vmatpush1.bf16.msra.mxu1 %v5171_v57 }
 0x320   :  { %3696 = vmatprep.subr.bf16.mxu1 %v5179_v58  ;;  %v5237_v58 = vld [vmem:[%s7082_s8 + $0x4d0] ss:$28 sps:$4 sm:$0xff]  }
 0x323   :  { %3697 = vmatpush1.bf16.msra.mxu1 %v5177_v59  ;;  %v5240_v59 = vld [vmem:[%s7082_s8 + $0x4d8] ss:$28 sps:$4 sm:$0xff]  }
 0x324   :  { %3698 = vmatprep.subr.bf16.mxu1 %v5185_v60 }
 0x327   :  { %3699 = vmatpush1.bf16.msra.mxu1 %v5183_v61 }
 0x328   :  { %3700 = vmatprep.subr.bf16.mxu1 %v5191_v62  ;;  %v5245_v62 = vld [vmem:[%s7082_s8 + $0x50c] ss:$28 sps:$4 sm:$0xff]  }
 0x32b   :  { %3701 = vmatpush1.bf16.msra.mxu1 %v5189_v0 }
 0x32c   :  { %3702 = vmatprep.subr.bf16.mxu1 %v5197_v2 }
 0x32f   :  { %3703 = vmatpush1.bf16.msra.mxu1 %v5195_v4 }
 0x330   :  { %3715 = vmatprep.subr.bf16.mxu1 %v5203_v6  ;;  %v5246_v6 = vld [vmem:[%s7082_s8 + $0x510] ss:$28 sps:$4 sm:$0xff]  }
 0x3a5   :  { %v2468_v11 = vpop.f32.mrb[4].mxu1 }
 0x3a6   :  { %v2469_v12 = vadd.f32 %v2468_v11, %v2257_v9  ;;  %v2470_v13 = vpop.f32.mrb[5].mxu1 }
 0x3a7   :  { %v2471_v18 = vadd.f32 %v2470_v13, %v2261_v10  ;;  %v2472_v21 = vpop.f32.mrb[6].mxu1 }
 0x3a8   :  { %v2473_v22 = vadd.f32 %v2472_v21, %v2257_v9  ;;  %v2474_v23 = vpop.f32.mrb[7].mxu1  ;;  %v2520_v25 = vmax.f32 %v2469_v12, 0.0  ;;  %v5251_v9 = vld [vmem:[%s7082_s8 + $0x544] ss:$28 sps:$4 sm:$0xff]  }
 0x3a9   :  { %v2475_v24 = vadd.f32 %v2474_v23, %v2261_v10  ;;  %v2521_v27 = vmax.f32 %v2471_v18, 0.0  ;;  %v5254_v10 = vld [vmem:[%s7082_s8 + $0x54c] ss:$28 sps:$4 sm:$0xff]   ;;  %v5249_v21 = vld [vmem:[%s7082_s8 + $0x540] ss:$28 sps:$4 sm:$0xff]  }
 0x3aa   :  { %v2524_v26 = vmax.f32 %v2473_v22, 0.0  ;;  %v5252_v22 = vld [vmem:[%s7082_s8 + $0x548] ss:$28 sps:$4 sm:$0xff]   ;;  %v5257_v23 = vld [vmem:[%s7082_s8 + $0x14] ss:$28 sps:$4 sm:$0xff]  }
 0x3ab   :  { %v2525_v28 = vmax.f32 %v2475_v24, 0.0  ;;  %v5258_v24 = vld [vmem:[%s7082_s8 + $0x1d8] ss:$28 sps:$4 sm:$0xff]  }
 0x3ac   :  { %v6648_v29 = vpack.c.bf16 %v2524_v26, %v2520_v25  ;;  %v5255_v25 = vld [vmem:[%s7082_s8 + $0x10] ss:$28 sps:$4 sm:$0xff]   ;;  %v5259_v26 = vld [vmem:[%s7082_s8 + $0x18] ss:$28 sps:$4 sm:$0xff]  }
 0x3ad   :  { %v6650_v30 = vpack.c.bf16 %v2525_v28, %v2521_v27  ;;  %v5262_v27 = vld [vmem:[%s7082_s8 + $0x4c] ss:$28 sps:$4 sm:$0xff]  }
 0x3ae   :  { %v5263_v28 = vld [vmem:[%s7082_s8 + $0x210] ss:$28 sps:$4 sm:$0xff]  }
 0x3af   :  { %3704 = vmatprep.mubr.bf16.mxu1 %v6650_v30  ;;  %3790 = vmatprep.mubr.bf16.mxu0 %v6650_v30 }
 0x3b0   :  { %3705 = vmatmul.mubr.bf16.vlgmr.msra.gmra.mrb[12].mxu1 %v6648_v29  ;;  %3791 = vmatmul.mubr.bf16.vlgmr.msra.gmra.mrb[8].mxu0 %v6648_v29 }
 0x3b1   :  { %3716 = vmatpush1.bf16.msra.mxu1 %v5201_v31  ;;  %3802 = vmatpush1.bf16.msra.mxu0 %v5204_v32  ;;  %v5260_v31 = vld [vmem:[%s7082_s8 + $0x48] ss:$28 sps:$4 sm:$0xff]   ;;  %v5264_v32 = vld [vmem:[%s7082_s8 + $0x50] ss:$28 sps:$4 sm:$0xff]  }
 0x3b2   :  { %3717 = vmatprep.subr.bf16.mxu1 %v5209_v33  ;;  %3803 = vmatprep.subr.bf16.mxu0 %v5212_v34  ;;  %v5267_v33 = vld [vmem:[%s7082_s8 + $0x84] ss:$28 sps:$4 sm:$0xff]  }
 0x3b3   :  { %v5268_v34 = vld [vmem:[%s7082_s8 + $0x248] ss:$28 sps:$4 sm:$0xff]  }
 0x3b5   :  { %3718 = vmatpush1.bf16.msra.mxu1 %v5207_v35  ;;  %3804 = vmatpush1.bf16.msra.mxu0 %v5210_v36  ;;  %v5265_v35 = vld [vmem:[%s7082_s8 + $0x80] ss:$28 sps:$4 sm:$0xff]  }
 0x3b6   :  { %3719 = vmatprep.subr.bf16.mxu1 %v5215_v37  ;;  %3805 = vmatprep.subr.bf16.mxu0 %v5218_v38  ;;  %v5272_v36 = vld [vmem:[%s7082_s8 + $0xbc] ss:$28 sps:$4 sm:$0xff]  }
 0x3b7   :  { %v5273_v37 = vld [vmem:[%s7082_s8 + $0x280] ss:$28 sps:$4 sm:$0xff]   ;;  %v5270_v38 = vld [vmem:[%s7082_s8 + $0xb8] ss:$28 sps:$4 sm:$0xff]  }
 0x3b9   :  { %3720 = vmatpush1.bf16.msra.mxu1 %v5213_v39  ;;  %3806 = vmatpush1.bf16.msra.mxu0 %v5216_v40  ;;  %v5274_v39 = vld [vmem:[%s7082_s8 + $0xc0] ss:$28 sps:$4 sm:$0xff]   ;;  %v5277_v40 = vld [vmem:[%s7082_s8 + $0xf4] ss:$28 sps:$4 sm:$0xff]  }
 0x3ba   :  { %3721 = vmatprep.subr.bf16.mxu1 %v5221_v41  ;;  %3807 = vmatprep.subr.bf16.mxu0 %v5224_v42  ;;  %v5278_v41 = vld [vmem:[%s7082_s8 + $0x2b8] ss:$28 sps:$4 sm:$0xff]   ;;  %v5275_v42 = vld [vmem:[%s7082_s8 + $0xf0] ss:$28 sps:$4 sm:$0xff]  }
 0x3bd   :  { %3722 = vmatpush1.bf16.msra.mxu1 %v5219_v43  ;;  %3808 = vmatpush1.bf16.msra.mxu0 %v5222_v44  ;;  %v5279_v43 = vld [vmem:[%s7082_s8 + $0xf8] ss:$28 sps:$4 sm:$0xff]   ;;  %v5282_v44 = vld [vmem:[%s7082_s8 + $0x12c] ss:$28 sps:$4 sm:$0xff]  }
 0x3be   :  { %3723 = vmatprep.subr.bf16.mxu1 %v5227_v45  ;;  %3809 = vmatprep.subr.bf16.mxu0 %v5230_v46  ;;  %v5283_v45 = vld [vmem:[%s7082_s8 + $0x2f0] ss:$28 sps:$4 sm:$0xff]   ;;  %v5280_v46 = vld [vmem:[%s7082_s8 + $0x128] ss:$28 sps:$4 sm:$0xff]  }
 0x3c1   :  { %3724 = vmatpush1.bf16.msra.mxu1 %v5225_v47  ;;  %3810 = vmatpush1.bf16.msra.mxu0 %v5228_v48  ;;  %v5284_v47 = vld [vmem:[%s7082_s8 + $0x130] ss:$28 sps:$4 sm:$0xff]   ;;  %v5287_v48 = vld [vmem:[%s7082_s8 + $0x164] ss:$28 sps:$4 sm:$0xff]  }
 0x3c2   :  { %3725 = vmatprep.subr.bf16.mxu1 %v5233_v49  ;;  %3811 = vmatprep.subr.bf16.mxu0 %v5236_v50  ;;  %v5288_v49 = vld [vmem:[%s7082_s8 + $0x328] ss:$28 sps:$4 sm:$0xff]   ;;  %v5285_v50 = vld [vmem:[%s7082_s8 + $0x160] ss:$28 sps:$4 sm:$0xff]  }
 0x3c5   :  { %v2511_v57 = vpop.f32.mrb[8].mxu1  ;;  %3726 = vmatpush1.bf16.msra.mxu1 %v5231_v51  ;;  %3812 = vmatpush1.bf16.msra.mxu0 %v5234_v52  ;;  %v5289_v51 = vld [vmem:[%s7082_s8 + $0x168] ss:$28 sps:$4 sm:$0xff]   ;;  %v5292_v52 = vld [vmem:[%s7082_s8 + $0x19c] ss:$28 sps:$4 sm:$0xff]  }
 0x3c6   :  { %v2512_v60 = vadd.f32 %v2511_v57, %v2265_v53  ;;  %v2513_v61 = vpop.f32.mrb[9].mxu1  ;;  %3727 = vmatprep.subr.bf16.mxu1 %v5239_v54  ;;  %3813 = vmatprep.subr.bf16.mxu0 %v5242_v55  ;;  %v5290_v54 = vld [vmem:[%s7082_s8 + $0x198] ss:$28 sps:$4 sm:$0xff]   ;;  %v5294_v55 = vld [vmem:[%s7082_s8 + $0x1a0] ss:$28 sps:$4 sm:$0xff]  }
 0x3c7   :  { %v2514_v0 = vadd.f32 %v2513_v61, %v2269_v56  ;;  %v2515_v1 = vpop.f32.mrb[10].mxu1  ;;  %v5295_v57 = vld [vmem:[%s7082_s8 + $0x1d0] ss:$28 sps:$4 sm:$0xff]  }
 0x3c8   :  { %v2516_v2 = vadd.f32 %v2515_v1, %v2265_v53  ;;  %v2517_v3 = vpop.f32.mrb[11].mxu1  ;;  %v2522_v7 = vmax.f32 %v2512_v60, 0.0  ;;  %v5293_v53 = vld [vmem:[%s7082_s8 + $0x360] ss:$28 sps:$4 sm:$0xff]   ;;  %v5299_v60 = vld [vmem:[%s7082_s8 + $0x208] ss:$28 sps:$4 sm:$0xff]  }
 0x3c9   :  { %v2518_v4 = vadd.f32 %v2517_v3, %v2269_v56  ;;  %3728 = vmatpush1.bf16.msra.mxu1 %v5237_v58  ;;  %3814 = vmatpush1.bf16.msra.mxu0 %v5240_v59  ;;  %v2523_v11 = vmax.f32 %v2514_v0, 0.0  ;;  %v5297_v56 = vld [vmem:[%s7082_s8 + $0x1d4] ss:$28 sps:$4 sm:$0xff]   ;;  %v5301_v59 = vld [vmem:[%s7082_s8 + $0x20c] ss:$28 sps:$4 sm:$0xff]  }
 0x3ca   :  { %v2526_v8 = vmax.f32 %v2516_v2, 0.0  ;;  %3729 = vmatprep.subr.bf16.mxu1 %v5245_v62  ;;  %3815 = vmatprep.subr.bf16.mxu0 %v5248_v63  ;;  %v5298_v58 = vld [vmem:[%s7082_s8 + $0x398] ss:$28 sps:$4 sm:$0xff]   ;;  %v5302_v61 = vld [vmem:[%s7082_s8 + $0x3d0] ss:$28 sps:$4 sm:$0xff]  }
 0x3cb   :  { %v2527_v12 = vmax.f32 %v2518_v4, 0.0  ;;  %v5305_v62 = vld [vmem:[%s7082_s8 + $0x244] ss:$28 sps:$4 sm:$0xff]   ;;  %v5309_v1 = vld [vmem:[%s7082_s8 + $0x27c] ss:$28 sps:$4 sm:$0xff]  }
 0x3cc   :  { %v6756_v13 = vpack.c.bf16 %v2526_v8, %v2522_v7  ;;  %v5303_v63 = vld [vmem:[%s7082_s8 + $0x240] ss:$28 sps:$4 sm:$0xff]   ;;  %v5306_v0 = vld [vmem:[%s7082_s8 + $0x408] ss:$28 sps:$4 sm:$0xff]   ;;  %v5307_v2 = vld [vmem:[%s7082_s8 + $0x278] ss:$28 sps:$4 sm:$0xff]  }
 0x3cd   :  { %v6758_v18 = vpack.c.bf16 %v2527_v12, %v2523_v11  ;;  %3730 = vmatpush1.bf16.msra.mxu1 %v5243_v5  ;;  %3816 = vmatpush1.bf16.msra.mxu0 %v5246_v6  ;;  %v5310_v3 = vld [vmem:[%s7082_s8 + $0x440] ss:$28 sps:$4 sm:$0xff]   ;;  %v5313_v4 = vld [vmem:[%s7082_s8 + $0x2b4] ss:$28 sps:$4 sm:$0xff]   ;;  %v5317_v7 = vld [vmem:[%s7082_s8 + $0x2ec] ss:$28 sps:$4 sm:$0xff]  }
 0x3ce   :  { %3731 = vmatprep.subr.bf16.mxu1 %v5251_v9  ;;  %3817 = vmatprep.subr.bf16.mxu0 %v5254_v10  ;;  %v5311_v5 = vld [vmem:[%s7082_s8 + $0x2b0] ss:$28 sps:$4 sm:$0xff]   ;;  %v5314_v6 = vld [vmem:[%s7082_s8 + $0x478] ss:$28 sps:$4 sm:$0xff]   ;;  %v5315_v8 = vld [vmem:[%s7082_s8 + $0x2e8] ss:$28 sps:$4 sm:$0xff]  }
 0x3cf   :  { %4545 = vmatprep.mubr.msk.bf16.mxu1 %vm2117_vm0, %v6758_v18  ;;  %4546 = vmatprep.mubr.msk.bf16.mxu0 %vm2117_vm0, %v6758_v18  ;;  %v5318_v9 = vld [vmem:[%s7082_s8 + $0x4b0] ss:$28 sps:$4 sm:$0xff]   ;;  %v5321_v10 = vld [vmem:[%s7082_s8 + $0x324] ss:$28 sps:$4 sm:$0xff]  }
 0x3d0   :  { %v5319_v11 = vld [vmem:[%s7082_s8 + $0x320] ss:$28 sps:$4 sm:$0xff]   ;;  %v5322_v12 = vld [vmem:[%s7082_s8 + $0x4e8] ss:$28 sps:$4 sm:$0xff]  }
 0x3d1   :  { %3732 = vmatpush1.bf16.msra.mxu1 %v5249_v21  ;;  %3818 = vmatpush1.bf16.msra.mxu0 %v5252_v22  ;;  %v5325_v21 = vld [vmem:[%s7082_s8 + $0x35c] ss:$28 sps:$4 sm:$0xff]  }
 0x3d2   :  { %3844 = vmatprep.subr.bf16.mxu1 %v5257_v23  ;;  %4549 = vmatprep.subr.bf16.mxu0 %v5258_v24  ;;  %v5323_v22 = vld [vmem:[%s7082_s8 + $0x358] ss:$28 sps:$4 sm:$0xff]   ;;  %v5326_v23 = vld [vmem:[%s7082_s8 + $0x520] ss:$28 sps:$4 sm:$0xff]  }
 0x3d3   :  { %v5329_v24 = vld [vmem:[%s7082_s8 + $0x394] ss:$28 sps:$4 sm:$0xff]  }
 0x3d4   :  { %3748 = vmatmul.mubr.bf16.vlgmr.msra.gmra.mrb[12].mxu1 %v6756_v13  ;;  %3834 = vmatmul.mubr.bf16.vlgmr.msra.gmra.mrb[8].mxu0 %v6756_v13 }
 0x3d5   :  { %3845 = vmatpush1.bf16.msra.mxu1 %v5255_v25  ;;  %3876 = vmatprep.mubr.bf16.mxu1 %v6650_v30  ;;  %v5327_v25 = vld [vmem:[%s7082_s8 + $0x390] ss:$28 sps:$4 sm:$0xff]  }
 0x3d6   :  { %4550 = vmatpush3.bf16.msra.mxu0 %v5259_v26  ;;  %3962 = vmatprep.mubr.bf16.mxu0 %v6650_v30  ;;  %v5269_v30 = vld [vmem:[%s7082_s8 + $0x88] ss:$28 sps:$4 sm:$0xff]   ;;  %v5330_v26 = vld [vmem:[%s7082_s8 + $0x558] ss:$28 sps:$4 sm:$0xff]  }
 0x3d7   :  { %3846 = vmatprep.subr.bf16.mxu1 %v5262_v27  ;;  %4551 = vmatprep.subr.bf16.mxu0 %v5263_v28  ;;  %v5333_v27 = vld [vmem:[%s7082_s8 + $0x3cc] ss:$28 sps:$4 sm:$0xff]  }
 0x3d8   :  { %v5331_v28 = vld [vmem:[%s7082_s8 + $0x3c8] ss:$28 sps:$4 sm:$0xff]  }
 0x3d9   :  { %3847 = vmatpush1.bf16.msra.mxu1 %v5260_v31  ;;  %v5336_v31 = vld [vmem:[%s7082_s8 + $0x404] ss:$28 sps:$4 sm:$0xff]  }
 0x3da   :  { %4552 = vmatpush3.bf16.msra.mxu0 %v5264_v32  ;;  %3848 = vmatprep.subr.bf16.mxu1 %v5267_v33  ;;  %v5342_v32 = vld [vmem:[%s7082_s8 + $0x474] ss:$28 sps:$4 sm:$0xff]  }
 0x3db   :  { %4553 = vmatprep.subr.bf16.mxu0 %v5268_v34  ;;  %v5340_v33 = vld [vmem:[%s7082_s8 + $0x470] ss:$28 sps:$4 sm:$0xff]  }
 0x3dc   :  { %v5345_v34 = vld [vmem:[%s7082_s8 + $0x4ac] ss:$28 sps:$4 sm:$0xff]  }
 0x3dd   :  { %3849 = vmatpush1.bf16.msra.mxu1 %v5265_v35  ;;  %v5343_v35 = vld [vmem:[%s7082_s8 + $0x4a8] ss:$28 sps:$4 sm:$0xff]  }
 0x3de   :  { %4554 = vmatpush3.bf16.msra.mxu0 %v5269_v30  ;;  %3850 = vmatprep.subr.bf16.mxu1 %v5272_v36  ;;  %v5348_v30 = vld [vmem:[%s7082_s8 + $0x4e4] ss:$28 sps:$4 sm:$0xff]  }
 0x3df   :  { %4555 = vmatprep.subr.bf16.mxu0 %v5273_v37  ;;  %v5346_v36 = vld [vmem:[%s7082_s8 + $0x4e0] ss:$28 sps:$4 sm:$0xff]  }
 0x3e0   :  { %v5351_v37 = vld [vmem:[%s7082_s8 + $0x51c] ss:$28 sps:$4 sm:$0xff]  }
 0x3e1   :  { %3851 = vmatpush1.bf16.msra.mxu1 %v5270_v38  ;;  %v5349_v38 = vld [vmem:[%s7082_s8 + $0x518] ss:$28 sps:$4 sm:$0xff]  }
 0x3e2   :  { %4556 = vmatpush3.bf16.msra.mxu0 %v5274_v39  ;;  %3852 = vmatprep.subr.bf16.mxu1 %v5277_v40  ;;  %v5354_v39 = vld [vmem:[%s7082_s8 + $0x554] ss:$28 sps:$4 sm:$0xff]  }
 0x3e3   :  { %4557 = vmatprep.subr.bf16.mxu0 %v5278_v41  ;;  %v5352_v40 = vld [vmem:[%s7082_s8 + $0x550] ss:$28 sps:$4 sm:$0xff]   ;;  %v7019_v41 = vld [vmem:[%s7088_s9] sm:$0xff] }
 0x3e5   :  { %3853 = vmatpush1.bf16.msra.mxu1 %v5275_v42  ;;  %v2737_v42 = vrot.slane %v7019_v41, %v6263_v15 }
 0x3e6   :  { %4558 = vmatpush3.bf16.msra.mxu0 %v5279_v43  ;;  %3854 = vmatprep.subr.bf16.mxu1 %v5282_v44  ;;  %v2745_v43 = vrot.slane %v7019_v41, %v6266_v17  ;;  %v2741_v44 = vrot.slane %v7019_v41, %v6272_v19 }
 0x3e7   :  { %4559 = vmatprep.subr.bf16.mxu0 %v5283_v45  ;;  %v2749_v45 = vrot.slane %v7019_v41, %v6275_v20 }
 0x3e9   :  { %3855 = vmatpush1.bf16.msra.mxu1 %v5280_v46 }
 0x3ea   :  { %4560 = vmatpush3.bf16.msra.mxu0 %v5284_v47  ;;  %3856 = vmatprep.subr.bf16.mxu1 %v5287_v48 }
 0x3eb   :  { %4561 = vmatprep.subr.bf16.mxu0 %v5288_v49 }
 0x3ed   :  { %3857 = vmatpush1.bf16.msra.mxu1 %v5285_v50 }
 0x3ee   :  { %4562 = vmatpush3.bf16.msra.mxu0 %v5289_v51  ;;  %3858 = vmatprep.subr.bf16.mxu1 %v5292_v52 }
 0x3ef   :  { %4563 = vmatprep.subr.bf16.mxu0 %v5293_v53 }
 0x3f1   :  { %3859 = vmatpush1.bf16.msra.mxu1 %v5290_v54 }
 0x3f2   :  { %4564 = vmatpush3.bf16.msra.mxu0 %v5294_v55  ;;  %3860 = vmatprep.subr.bf16.mxu1 %v5297_v56 }
 0x3f3   :  { %3971 = vmatprep.subr.bf16.mxu0 %v5387_v16 }
 0x3f5   :  { %3963 = vmatmul.mubr.bf16.vlgmr.msra.gmra.mrb[12].mxu0 %v6648_v29  ;;  %3861 = vmatpush1.bf16.msra.mxu1 %v5295_v57 }
 0x3f6   :  { %3972 = vmatpush1.bf16.msra.mxu0 %v5298_v58  ;;  %4548 = vmatprep.mubr.msk.bf16.mxu0 %vm2117_vm0, %v6758_v18 }
 0x3f7   :  { %3862 = vmatprep.subr.bf16.mxu1 %v5301_v59  ;;  %3973 = vmatprep.subr.bf16.mxu0 %v5387_v16 }
 0x3f9   :  { %3863 = vmatpush1.bf16.msra.mxu1 %v5299_v60 }
 0x3fa   :  { %3974 = vmatpush1.bf16.msra.mxu0 %v5302_v61  ;;  %3864 = vmatprep.subr.bf16.mxu1 %v5305_v62 }
 0x3fb   :  { %3975 = vmatprep.subr.bf16.mxu0 %v5387_v16 }
 0x3fd   :  { %3865 = vmatpush1.bf16.msra.mxu1 %v5303_v63 }
 0x3fe   :  { %3976 = vmatpush1.bf16.msra.mxu0 %v5306_v0  ;;  %3866 = vmatprep.subr.bf16.mxu1 %v5309_v1 }
 0x3ff   :  { %3977 = vmatprep.subr.bf16.mxu0 %v5387_v16 }
 0x401   :  { %3867 = vmatpush1.bf16.msra.mxu1 %v5307_v2 }
 0x402   :  { %3978 = vmatpush1.bf16.msra.mxu0 %v5310_v3  ;;  %3868 = vmatprep.subr.bf16.mxu1 %v5313_v4 }
 0x403   :  { %3979 = vmatprep.subr.bf16.mxu0 %v5387_v16 }
 0x405   :  { %3869 = vmatpush1.bf16.msra.mxu1 %v5311_v5 }
 0x406   :  { %3980 = vmatpush1.bf16.msra.mxu0 %v5314_v6  ;;  %3870 = vmatprep.subr.bf16.mxu1 %v5317_v7  ;;  %v2760_v7 = vsub.s32 6, %v6260_v14 }
 0x407   :  { %3981 = vmatprep.subr.bf16.mxu0 %v5387_v16 }
 0x409   :  { %3871 = vmatpush1.bf16.msra.mxu1 %v5315_v8  ;;  %v2761_v8 = vrot.slane %v7019_v41, %v2760_v7 }
 0x40a   :  { %3982 = vmatpush1.bf16.msra.mxu0 %v5318_v9  ;;  %3872 = vmatprep.subr.bf16.mxu1 %v5321_v10 }
 0x40b   :  { %3983 = vmatprep.subr.bf16.mxu0 %v5387_v16 }
 0x40d   :  { %3873 = vmatpush1.bf16.msra.mxu1 %v5319_v11 }
 0x40e   :  { %3984 = vmatpush1.bf16.msra.mxu0 %v5322_v12  ;;  %3874 = vmatprep.subr.bf16.mxu1 %v5325_v21 }
 0x40f   :  { %3985 = vmatprep.subr.bf16.mxu0 %v5387_v16 }
 0x411   :  { %3875 = vmatpush1.bf16.msra.mxu1 %v5323_v22 }
 0x412   :  { %3986 = vmatpush1.bf16.msra.mxu0 %v5326_v23  ;;  %3887 = vmatprep.subr.bf16.mxu1 %v5329_v24 }
 0x413   :  { %3987 = vmatprep.subr.bf16.mxu0 %v5387_v16  ;;  %v5334_v16 = vld [vmem:[%s7082_s8 + $0x400] ss:$28 sps:$4 sm:$0xff]  }
 0x414   :  { %3877 = vmatmul.mubr.bf16.vlgmr.msra.gmra.mrb[16].mxu1 %v6648_v29  ;;  %v5339_v29 = vld [vmem:[%s7082_s8 + $0x43c] ss:$28 sps:$4 sm:$0xff]  }
 0x415   :  { %3888 = vmatpush1.bf16.msra.mxu1 %v5327_v25  ;;  %4547 = vmatprep.mubr.msk.bf16.mxu1 %vm2117_vm0, %v6758_v18  ;;  %v5337_v18 = vld [vmem:[%s7082_s8 + $0x438] ss:$28 sps:$4 sm:$0xff]  }
 0x416   :  { %3988 = vmatpush1.bf16.msra.mxu0 %v5330_v26  ;;  %3889 = vmatprep.subr.bf16.mxu1 %v5333_v27  ;;  %v2752_v27 = vsub.s32 4, %v6260_v14 }
 0x419   :  { %4004 = vmatmul.mubr.bf16.vlgmr.msra.gmra.mrb[16].mxu0 %v6756_v13  ;;  %3890 = vmatpush1.bf16.msra.mxu1 %v5331_v28  ;;  %v2756_v28 = vsub.s32 5, %v6260_v14 }
 0x41a   :  { %3891 = vmatprep.subr.bf16.mxu1 %v5336_v31  ;;  %v2753_v31 = vrot.slane %v7019_v41, %v2752_v27 }
 0x41d   :  { %3892 = vmatpush1.bf16.msra.mxu1 %v5334_v16  ;;  %v2757_v16 = vrot.slane %v7019_v41, %v2756_v28 }
 0x41e   :  { %3893 = vmatprep.subr.bf16.mxu1 %v5339_v29 }
 0x421   :  { %3894 = vmatpush1.bf16.msra.mxu1 %v5337_v18 }
 0x422   :  { %3895 = vmatprep.subr.bf16.mxu1 %v5342_v32 }
 0x425   :  { %3896 = vmatpush1.bf16.msra.mxu1 %v5340_v33 }
 0x426   :  { %3897 = vmatprep.subr.bf16.mxu1 %v5345_v34 }
 0x429   :  { %3898 = vmatpush1.bf16.msra.mxu1 %v5343_v35 }
 0x42a   :  { %3899 = vmatprep.subr.bf16.mxu1 %v5348_v30 }
 0x42d   :  { %3900 = vmatpush1.bf16.msra.mxu1 %v5346_v36 }
 0x42e   :  { %3901 = vmatprep.subr.bf16.mxu1 %v5351_v37 }
 0x431   :  { %3902 = vmatpush1.bf16.msra.mxu1 %v5349_v38 }
 0x432   :  { %3903 = vmatprep.subr.bf16.mxu1 %v5354_v39 }
 0x435   :  { %3904 = vmatpush1.bf16.msra.mxu1 %v5352_v40 }
 0x438   :  { %3920 = vmatmul.mubr.bf16.vlgmr.msra.gmra.mrb[16].mxu1 %v6756_v13 }
 0x4a7   :  { %v3749_v46 = vpop.f32.mrb[12].mxu1  ;;  %v3835_v47 = vpop.f32.mrb[8].mxu0 }
 0x4a8   :  { %v4583_v13 = vadd.f32 %v3749_v46, %v2737_v42  ;;  %v4587_v48 = vadd.f32 %v3835_v47, %v2745_v43  ;;  %v3751_v49 = vpop.f32.mrb[13].mxu1  ;;  %v3837_v50 = vpop.f32.mrb[9].mxu0 }
 0x4a9   :  { %v4584_v51 = vadd.f32 %v3751_v49, %v2741_v44  ;;  %v4588_v52 = vadd.f32 %v3837_v50, %v2749_v45  ;;  %v3753_v53 = vpop.f32.mrb[14].mxu1  ;;  %v3839_v54 = vpop.f32.mrb[10].mxu0 }
 0x4aa   :  { %5359 = vtanh.f32 %v4583_v13  ;;  %v4585_v15 = vadd.f32 %v3753_v53, %v2737_v42  ;;  %v3755_v55 = vpop.f32.mrb[15].mxu1  ;;  %v3841_v17 = vpop.f32.mrb[11].mxu0  ;;  %v4589_v56 = vadd.f32 %v3839_v54, %v2745_v43 }
 0x4ab   :  { %5361 = vtanh.f32 %v4587_v48  ;;  %v4586_v19 = vadd.f32 %v3755_v55, %v2741_v44  ;;  %v4590_v20 = vadd.f32 %v3841_v17, %v2749_v45 }
 0x4ac   :  { %5363 = vtanh.f32 %v4584_v51 }
 0x4ad   :  { %5365 = vtanh.f32 %v4588_v52 }
 0x4ae   :  { %5367 = vtanh.f32 %v4585_v15 }
 0x4af   :  { %5369 = vtanh.f32 %v4589_v56 }
 0x4b0   :  { %5371 = vtanh.f32 %v4586_v19 }
 0x4b1   :  { %5373 = vtanh.f32 %v4590_v20 }
 0x4b4   :  { %v5360_v57 = vpop.eup %5359 }
 0x4b5   :  { %v5362_v58 = vpop.eup %5361  ;;  %4026 = vst [vmem:[%s7089_s10] sm:$0xff] %v5360_v57 }
 0x4b6   :  { %v5364_v59 = vpop.eup %5363  ;;  %4028 = vst [vmem:[%s7089_s10 + $0x10] sm:$0xff] %v5362_v58 }
 0x4b7   :  { %v5366_v60 = vpop.eup %5365  ;;  %4027 = vst [vmem:[%s7089_s10 + $0x8] sm:$0xff] %v5364_v59 }
 0x4b8   :  { %v5368_v61 = vpop.eup %5367  ;;  %4029 = vst [vmem:[%s7089_s10 + $0x18] sm:$0xff] %v5366_v60 }
 0x4b9   :  { %v5370_v62 = vpop.eup %5369  ;;  %4033 = vst [vmem:[%s7089_s10 + $0x38] sm:$0xff] %v5368_v61 }
 0x4ba   :  { %v5372_v63 = vpop.eup %5371  ;;  %4035 = vst [vmem:[%s7089_s10 + $0x48] sm:$0xff] %v5370_v62 }
 0x4bb   :  { %v5374_v0 = vpop.eup %5373  ;;  %4034 = vst [vmem:[%s7089_s10 + $0x40] sm:$0xff] %v5372_v63 }
 0x4bc   :  { %4036 = vst [vmem:[%s7089_s10 + $0x50] sm:$0xff] %v5374_v0 }
 0x4c8   :  { %v4565_v1 = vpop.f32.mrb[12].mxu0 }
 0x4c9   :  { %v4566_v2 = vpop.f32.mrb[13].mxu0 }
 0x4ca   :  { %v4567_v3 = vadd.f32 %v4566_v2, %v4565_v1  ;;  %v4568_v4 = vpop.f32.mrb[14].mxu0 }
 0x4cb   :  { %v4569_v5 = vpop.f32.mrb[15].mxu0 }
 0x4cc   :  { %v4570_v6 = vadd.f32 %v4569_v5, %v4568_v4  ;;  %v3965_v9 = vadd.f32 %v4567_v3, %v2761_v8 }
 0x4ce   :  { %v3968_v21 = vadd.f32 %v4570_v6, %v2761_v8 }
 0x4ec   :  { %v4005_v10 = vpop.f32.mrb[16].mxu0 }
 0x4ed   :  { %v4006_v11 = vadd.f32 %v4005_v10, %v3965_v9  ;;  %v4007_v12 = vpop.f32.mrb[17].mxu0 }
 0x4ee   :  { %v4008_v22 = vpop.f32.mrb[18].mxu0 }
 0x4ef   :  { %5375 = vtanh.f32 %v4006_v11  ;;  %v4009_v23 = vadd.f32 %v4008_v22, %v3968_v21  ;;  %v4010_v24 = vpop.f32.mrb[19].mxu0 }
 0x4f1   :  { %5377 = vtanh.f32 %v4009_v23 }
 0x4f9   :  { %v5376_v25 = vpop.eup %5375 }
 0x4fa   :  { %4032 = vst [vmem:[%s7089_s10 + $0x30] sm:$0xff] %v5376_v25 }
 0x4fb   :  { %v5378_v26 = vpop.eup %5377 }
 0x4fc   :  { %4039 = vst [vmem:[%s7089_s10 + $0x68] sm:$0xff] %v5378_v26 }
 0x50b   :  { %v3921_v29 = vpop.f32.mrb[16].mxu1 }
 0x50c   :  { %v4591_v18 = vadd.f32 %v3921_v29, %v2753_v31  ;;  %v3923_v32 = vpop.f32.mrb[17].mxu1 }
 0x50d   :  { %v4592_v33 = vadd.f32 %v3923_v32, %v2757_v16  ;;  %v3925_v34 = vpop.f32.mrb[18].mxu1 }
 0x50e   :  { %5379 = vtanh.f32 %v4591_v18  ;;  %v4593_v35 = vadd.f32 %v3925_v34, %v2753_v31  ;;  %v3927_v30 = vpop.f32.mrb[19].mxu1 }
 0x50f   :  { %5381 = vtanh.f32 %v4592_v33  ;;  %v4594_v36 = vadd.f32 %v3927_v30, %v2757_v16 }
 0x510   :  { %5383 = vtanh.f32 %v4593_v35 }
 0x511   :  { %5385 = vtanh.f32 %v4594_v36 }
 0x518   :  { %v5380_v37 = vpop.eup %5379 }
 0x519   :  { %v5382_v38 = vpop.eup %5381  ;;  %4030 = vst [vmem:[%s7089_s10 + $0x20] sm:$0xff] %v5380_v37 }
 0x51a   :  { %v5384_v14 = vpop.eup %5383  ;;  %4031 = vst [vmem:[%s7089_s10 + $0x28] sm:$0xff] %v5382_v38 }
 0x51b   :  { %v5386_v39 = vpop.eup %5385  ;;  %4037 = vst [vmem:[%s7089_s10 + $0x58] sm:$0xff] %v5384_v14 }
 0x51c   :  { %4038 = vst [vmem:[%s7089_s10 + $0x60] sm:$0xff] %v5386_v39 }

</bundles_post_ra>
